<compile_context>
chip_gen: v7x
topology: tpu7x:2x2x1
jax: 0.10.0
libtpu: 0.0.40
codegen_flags: <defaults>
</compile_context>

<pallas_src>
import numpy as np

import jax
import jax.numpy as jnp
from jax.experimental import pallas as pl
from jax.experimental.pallas import tpu as pltpu

EPS = 1e-5          # nn.BatchNorm2d default eps
NEG_SLOPE = 0.1     # nn.LeakyReLU(0.1)


def _leaky(v):
    return jnp.where(v > 0, v, NEG_SLOPE * v)


# ----------------------------------------------------------------------------
# Roll helper: we need rolled[..., p] = a[..., (p + shift) % L].
# pltpu.roll is the cheap XLU path; its rotation direction is verified once at
# runtime with a tiny probe kernel.  If the probe cannot be used we fall back
# to jnp.roll (unambiguous semantics) and record it -- the fallback is
# numerically identical but lowers to slices+concat (more lane-shuffle work).
# ----------------------------------------------------------------------------
_ROLL_CACHE = {}


def _resolve_roll_fn():
    if "fn" in _ROLL_CACHE:
        return _ROLL_CACHE["fn"]

    def _jnp_fallback(a, shift):
        # jnp.roll(a, s)[p] = a[(p - s) % L]  =>  s = -shift
        return jnp.roll(a, -shift, axis=-1)

    roll_fn, impl = _jnp_fallback, "jnp.roll-fallback"
    try:
        L = 256
        x = jnp.arange(8 * L, dtype=jnp.float32).reshape(8, L)

        def probe(x_ref, o_ref):
            o_ref[...] = pltpu.roll(x_ref[...], 17, 1)

        y = pl.pallas_call(
            probe, out_shape=jax.ShapeDtypeStruct((8, L), jnp.float32))(x)
        y = np.asarray(jax.block_until_ready(y))
        fwd = np.array_equal(y, np.asarray(jnp.roll(x, 17, axis=1)))
        bwd = np.array_equal(y, np.asarray(jnp.roll(x, -17, axis=1)))
        if fwd or bwd:
            sign = 1 if fwd else -1

            def _pltpu_roll(a, shift, _sign=sign):
                Lax = a.shape[-1]
                # pltpu.roll(a, amt) == np.roll(a, sign*amt); want np.roll(a, -shift)
                amt = (-_sign * shift) % Lax
                if amt == 0:
                    return a
                return pltpu.roll(a, amt, a.ndim - 1)

            roll_fn, impl = _pltpu_roll, "pltpu.roll(XLU)"
    except Exception:
        pass  # keep jnp.roll fallback (correct, slower lowering)

    _ROLL_CACHE["fn"] = roll_fn
    _ROLL_CACHE["impl"] = impl   # inspect to verify the XLU path is in use
    return roll_fn


# ----------------------------------------------------------------------------
# Precomputed (host-side) border masks for the 9 taps of the 3x3 conv.
# Shape (9, 1, H*W) float32, value 1.0 where the tap reads inside the image.
# ----------------------------------------------------------------------------
def _make_tap_masks(H, W):
    yy, xx = np.meshgrid(np.arange(H), np.arange(W), indexing="ij")
    ms = []
    for dy in (-1, 0, 1):
        for dx in (-1, 0, 1):
            ok = ((yy + dy >= 0) & (yy + dy < H) &
                  (xx + dx >= 0) & (xx + dx < W))
            ms.append(ok.astype(np.float32).reshape(1, H * W))
    return jnp.asarray(np.stack(ms, axis=0))


# ----------------------------------------------------------------------------
# VMEM sizing helpers
# ----------------------------------------------------------------------------
def _vmem_capacity_bytes():
    try:
        return int(pltpu.get_tpu_info().vmem_capacity_bytes)
    except Exception:
        return 64 << 20      # conservative (v7x per-TensorCore VMEM)


def _vmem_bytes_estimate(C1, C_, hw, n_blocks):
    dbl = 2  # default double-buffering of pipelined operands
    io = dbl * (C1 * hw * 2        # x block, bf16
                + C1 * hw * 4)     # out block, f32
    consts = dbl * (9 * hw * 4                              # border masks
                    + (2 * C_ * C1 + C1 * 2 * C_) * 2       # w12, w3 (bf16)
                    + n_blocks * (C_ * C_ + 9 * C_ * C_) * 2  # wr1, wr2 (bf16)
                    + (2 * C_ + C1 + n_blocks * 2 * C_) * 4)  # biases
    live = hw * (2 * C_ * 4       # y12 f32
                 + C_ * 2         # y1 bf16 (kept until cv3)
                 + 3 * C_ * 4     # y2 / t / h f32 temporaries
                 + 9 * C_ * 2     # bf16 im2col patch
                 + C1 * 4)        # cv3 result before store
    return io + consts + live


# ----------------------------------------------------------------------------
# Pallas kernel: one full CSPStage forward for one image of the batch.
# All activations are (C, H*W); weights are pre-folded with BN, bf16.
# ----------------------------------------------------------------------------
def _make_csp_kernel(W, C_, n_blocks, roll_fn):
    offs = [(dy, dx) for dy in (-1, 0, 1) for dx in (-1, 0, 1)]

    def kernel(x_ref, masks_ref, w12_ref, b12_ref,
               wr1_ref, br1_ref, wr2_ref, br2_ref,
               w3_ref, b3_ref, o_ref):
        x_bf = x_ref[...]                                   # (C1, HW), bf16

        # cv1 + cv2 fused into a single MXU matmul (folded BN + LeakyReLU),
        # then sublane-sliced.  y1 is kept live as a small bf16 tensor until
        # cv3 instead of materialising an early (C1, HW) f32 partial output.
        y12 = _leaky(jnp.dot(w12_ref[...], x_bf,
                             preferred_element_type=jnp.float32)
                     + b12_ref[...])                        # (2C_, HW) f32
        y1_bf = y12[:C_].astype(jnp.bfloat16)               # (C_, HW) bf16
        y2 = y12[C_:]                                       # (C_, HW) f32

        # Hoist the border-mask predicates out of the unrolled residual loop
        # (JAX does not CSE them; with n_blocks > 1 they'd be re-emitted).
        mask_nz = [masks_ref[k] != 0.0 for k in range(9)]   # (1, HW) bool

        # Residual blocks on the y2 branch.
        for blk in range(n_blocks):
            # 1x1 conv + BN + LeakyReLU
            t = _leaky(jnp.dot(wr1_ref[blk], y2.astype(jnp.bfloat16),
                               preferred_element_type=jnp.float32)
                       + br1_ref[blk])

            # 3x3 conv (pad=1) + BN (no activation) as ONE fused im2col matmul.
            # The (9*C_, HW) patch matrix is assembled directly in bf16; rolls
            # and border masking stay in f32 (v5e-friendly elementwise path).
            taps = []
            for k, (dy, dx) in enumerate(offs):
                if dy == 0 and dx == 0:
                    taps.append(t.astype(jnp.bfloat16))
                else:
                    rolled = roll_fn(t, dy * W + dx)
                    taps.append(jnp.where(mask_nz[k], rolled, 0.0)
                                .astype(jnp.bfloat16))
            patch = jnp.concatenate(taps, axis=0)            # (9C_, HW) bf16
            h = jnp.dot(wr2_ref[blk], patch,
                        preferred_element_type=jnp.float32) + br2_ref[blk]

            # residual add + LeakyReLU (f32 VPU)
            y2 = _leaky(y2 + h)

        # cv3 on concat([y1, y2]) as a single K = 2*C_ matmul + LeakyReLU.
        y_cat = jnp.concatenate([y1_bf, y2.astype(jnp.bfloat16)], axis=0)
        o_ref[...] = _leaky(jnp.dot(w3_ref[...], y_cat,
                                    preferred_element_type=jnp.float32)
                            + b3_ref[...])

    return kernel


# ----------------------------------------------------------------------------
# Wrapper: NCHW in / NCHW out, only free reshapes (+ one bf16 cast) host-side.
# ----------------------------------------------------------------------------
def csp_stage_pallas(x_nchw, packed):
    (w12, b12, wr1, br1, wr2, br2, w3, b3) = packed
    N, C1, H, W = x_nchw.shape
    C_ = w12.shape[0] // 2
    HW = H * W
    n_blocks = wr1.shape[0]

    # x is only consumed as an MXU operand -> feed it to the kernel as bf16.
    x = x_nchw.reshape(N, C1, HW).astype(jnp.bfloat16)

    masks = _make_tap_masks(H, W)                           # (9, 1, HW) f32
    weights = [masks, w12, b12, wr1, br1, wr2, br2, w3, b3]

    def const_spec(a):
        if a.ndim == 2:
            return pl.BlockSpec(a.shape, lambda b: (0, 0))
        return pl.BlockSpec(a.shape, lambda b: (0, 0, 0))

    est = _vmem_bytes_estimate(C1, C_, HW, n_blocks)
    cap = _vmem_capacity_bytes()
    vmem_limit = int(min(cap * 7 // 8, max(2 * est, 16 << 20)))

    kernel = _make_csp_kernel(W, C_, n_blocks, _resolve_roll_fn())

    out = pl.pallas_call(
        kernel,
        out_shape=jax.ShapeDtypeStruct((N, C1, HW), jnp.float32),
        grid=(N,),
        in_specs=[pl.BlockSpec((None, C1, HW), lambda b: (b, 0, 0))]
                 + [const_spec(a) for a in weights],
        out_specs=pl.BlockSpec((None, C1, HW), lambda b: (b, 0, 0)),
        compiler_params=pltpu.CompilerParams(
            dimension_semantics=("parallel",),
            vmem_limit_bytes=vmem_limit),
    )(x, *weights)

    return out.reshape(N, C1, H, W)        # free reshape back to NCHW


# ----------------------------------------------------------------------------
# Deterministic parameter construction + BN folding + packing
# ----------------------------------------------------------------------------
def make_conv_params(key, c_out, c_in, k):
    kw, kg, kb, km, kv = jax.random.split(key, 5)
    return dict(
        w=jax.random.normal(kw, (c_out, c_in, k, k), jnp.float32) * 0.1,
        gamma=jax.random.uniform(kg, (c_out,), jnp.float32, 0.8, 1.2),
        beta=jax.random.normal(kb, (c_out,), jnp.float32) * 0.1,
        mean=jax.random.normal(km, (c_out,), jnp.float32) * 0.1,
        var=jax.random.uniform(kv, (c_out,), jnp.float32, 0.5, 1.5),
    )


def fold_1x1(p):
    scale = p['gamma'] / jnp.sqrt(p['var'] + EPS)
    w = p['w'][:, :, 0, 0] * scale[:, None]           # (c_out, c_in)
    bias = (p['beta'] - p['mean'] * scale)[:, None]    # (c_out, 1)
    return w, bias


def fold_3x3(p):
    scale = p['gamma'] / jnp.sqrt(p['var'] + EPS)
    taps = [p['w'][:, :, ky, kx] * scale[:, None]      # tap order matches kernel
            for ky in range(3) for kx in range(3)]
    w = jnp.concatenate(taps, axis=1)                  # (c_out, 9*c_in)
    bias = (p['beta'] - p['mean'] * scale)[:, None]    # (c_out, 1)
    return w, bias


def pack_folded_params(params, n_blocks):
    w1, b1 = fold_1x1(params['cv1'])
    w2, b2 = fold_1x1(params['cv2'])
    w3, b3 = fold_1x1(params['cv3'])                   # (C1, 2C_), (C1, 1)
    w12 = jnp.concatenate([w1, w2], axis=0)            # fused cv1/cv2 weight
    b12 = jnp.concatenate([b1, b2], axis=0)
    wr1 = jnp.stack([fold_1x1(params['res'][i]['conv1'])[0]
                     for i in range(n_blocks)])        # (n, C_, C_)
    br1 = jnp.stack([fold_1x1(params['res'][i]['conv1'])[1]
                     for i in range(n_blocks)])        # (n, C_, 1)
    wr2 = jnp.stack([fold_3x3(params['res'][i]['conv2'])[0]
                     for i in range(n_blocks)])        # (n, C_, 9*C_)
    br2 = jnp.stack([fold_3x3(params['res'][i]['conv2'])[1]
                     for i in range(n_blocks)])        # (n, C_, 1)
    bf = lambda a: a.astype(jnp.bfloat16)              # MXU operands in bf16
    return (bf(w12), b12, bf(wr1), br1, bf(wr2), br2, bf(w3), b3)


# ----------------------------------------------------------------------------
# Pure-JAX reference (PyTorch eval-mode semantics) for verification
# ----------------------------------------------------------------------------
def conv_bn_ref(x, p, act=True, pad=0):
    y = jax.lax.conv_general_dilated(
        x, p['w'], window_strides=(1, 1), padding=[(pad, pad), (pad, pad)],
        dimension_numbers=('NCHW', 'OIHW', 'NCHW'))
    scale = (p['gamma'] / jnp.sqrt(p['var'] + EPS))[None, :, None, None]
    shift = (p['beta'] - p['mean'] * p['gamma'] /
             jnp.sqrt(p['var'] + EPS))[None, :, None, None]
    y = y * scale + shift
    if act:
        y = jnp.where(y > 0, y, NEG_SLOPE * y)
    return y


def csp_stage_ref(x, params, n):
    y1 = conv_bn_ref(x, params['cv1'])
    y2 = conv_bn_ref(x, params['cv2'])
    for blk in range(n):
        t = conv_bn_ref(y2, params['res'][blk]['conv1'])
        h = conv_bn_ref(t, params['res'][blk]['conv2'], act=False, pad=1)
        s = y2 + h
        y2 = jnp.where(s > 0, s, NEG_SLOPE * s)
    cat = jnp.concatenate([y1, y2], axis=1)
    return conv_bn_ref(cat, params['cv3'])


# ----------------------------------------------------------------------------
if __name__ == "__main__":
    key = jax.random.PRNGKey(0)
    N, C1, H, W = 2, 16, 16, 16     # small synthetic shapes
    n_blocks = 2                    # exercise >1 residual block
    C_ = C1 // 2

    keys = jax.random.split(key, 4 + 2 * n_blocks)
    kx, k1, k2, k3 = keys[0], keys[1], keys[2], keys[3]
    kres = keys[4:]

    x = jax.random.normal(kx, (N, C1, H, W), jnp.float32)

    params = {
        'cv1': make_conv_params(k1, C_, C1, 1),
        'cv2': make_conv_params(k2, C_, C1, 1),
        'cv3': make_conv_params(k3, C1, 2 * C_, 1),
        'res': [
            {'conv1': make_conv_params(kres[2 * i], C_, C_, 1),
             'conv2': make_conv_params(kres[2 * i + 1], C_, C_, 3)}
            for i in range(n_blocks)
        ],
    }

    packed = pack_folded_params(params, n_blocks)

    out = csp_stage_pallas(x, packed)
    out = jax.block_until_ready(out)

    ref = csp_stage_ref(x, params, n_blocks)
    assert out.shape == ref.shape, (out.shape, ref.shape)
    max_err = float(jnp.max(jnp.abs(out - ref)))
    # bf16 MXU operands (f32 accumulation) -> loosened tolerance vs f32 ref.
    if not jnp.allclose(out, ref, rtol=2e-2, atol=3e-2):
        raise AssertionError(f"Pallas/ref mismatch, max abs err = {max_err}")

    print("KERNEL_OK")
</pallas_src>

<mosaic_0001>
module attributes {stable_mosaic.version = 11 : i64} {
  func.func @probe(%arg0: memref<8x256xf32, #tpu.memory_space<vmem>>, %arg1: memref<8x256xf32, #tpu.memory_space<vmem>>) attributes {dimension_semantics = [], scalar_prefetch = 0 : i64, scratch_operands = 0 : i64, tpu.core_type = #tpu.core_type<tc>} {
    %c0 = arith.constant 0 : index
    %c0_0 = arith.constant 0 : index
    %0 = vector.load %arg0[%c0, %c0_0] : memref<8x256xf32, #tpu.memory_space<vmem>>, vector<8x256xf32>
    %c17_i32 = arith.constant 17 : i32
    %1 = tpu.dynamic_rotate %0 by %c17_i32 dim 1 : vector<8x256xf32>, i32 -> vector<8x256xf32>
    %c0_1 = arith.constant 0 : index
    %c0_2 = arith.constant 0 : index
    %2 = vector.load %arg1[%c0_1, %c0_2] : memref<8x256xf32, #tpu.memory_space<vmem>>, vector<8x256xf32>
    tpu.vector_store %arg1[%c0_1, %c0_2], %1 {strides = array<i32>} : memref<8x256xf32, #tpu.memory_space<vmem>>, vector<8x256xf32>,
    return
  }
}

module attributes {stable_mosaic.version = 11 : i64} {
  func.func @kernel(%arg0: i32, %arg1: memref<1x16x256xbf16, #tpu.memory_space<vmem>>, %arg2: memref<9x1x256xf32, #tpu.memory_space<vmem>>, %arg3: memref<16x16xbf16, #tpu.memory_space<vmem>>, %arg4: memref<16x1xf32, #tpu.memory_space<vmem>>, %arg5: memref<2x8x8xbf16, #tpu.memory_space<vmem>>, %arg6: memref<2x8x1xf32, #tpu.memory_space<vmem>>, %arg7: memref<2x8x72xbf16, #tpu.memory_space<vmem>>, %arg8: memref<2x8x1xf32, #tpu.memory_space<vmem>>, %arg9: memref<16x16xbf16, #tpu.memory_space<vmem>>, %arg10: memref<16x1xf32, #tpu.memory_space<vmem>>, %arg11: memref<1x16x256xf32, #tpu.memory_space<vmem>>) attributes {dimension_semantics = [#tpu.dimension_semantics<parallel>], iteration_bounds = array<i64: 2>, scalar_prefetch = 0 : i64, scratch_operands = 0 : i64, tpu.core_type = #tpu.core_type<tc>, window_params = [{transform_indices = @transform_0, window_bounds = array<i64: 1, 16, 256>}, {pipeline_mode = #tpu.pipeline_mode<synchronous>, transform_indices = @transform_1, window_bounds = array<i64: 9, 1, 256>}, {pipeline_mode = #tpu.pipeline_mode<synchronous>, transform_indices = @transform_2, window_bounds = array<i64: 16, 16>}, {pipeline_mode = #tpu.pipeline_mode<synchronous>, transform_indices = @transform_3, window_bounds = array<i64: 16, 1>}, {pipeline_mode = #tpu.pipeline_mode<synchronous>, transform_indices = @transform_4, window_bounds = array<i64: 2, 8, 8>}, {pipeline_mode = #tpu.pipeline_mode<synchronous>, transform_indices = @transform_5, window_bounds = array<i64: 2, 8, 1>}, {pipeline_mode = #tpu.pipeline_mode<synchronous>, transform_indices = @transform_6, window_bounds = array<i64: 2, 8, 72>}, {pipeline_mode = #tpu.pipeline_mode<synchronous>, transform_indices = @transform_7, window_bounds = array<i64: 2, 8, 1>}, {pipeline_mode = #tpu.pipeline_mode<synchronous>, transform_indices = @transform_8, window_bounds = array<i64: 16, 16>}, {pipeline_mode = #tpu.pipeline_mode<synchronous>, transform_indices = @transform_9, window_bounds = array<i64: 16, 1>}, {transform_indices = @transform_10, window_bounds = array<i64: 1, 16, 256>}]} {
    %c0 = arith.constant 0 : index
    %c0_0 = arith.constant 0 : index
    %c0_1 = arith.constant 0 : index
    %0 = vector.load %arg1[%c0, %c0_0, %c0_1] : memref<1x16x256xbf16, #tpu.memory_space<vmem>>, vector<1x16x256xbf16>
    %1 = vector.shape_cast %0 : vector<1x16x256xbf16> to vector<16x256xbf16>
    %c0_2 = arith.constant 0 : index
    %c0_3 = arith.constant 0 : index
    %2 = vector.load %arg3[%c0_2, %c0_3] : memref<16x16xbf16, #tpu.memory_space<vmem>>, vector<16x16xbf16>
    %cst = arith.constant dense<0.000000e+00> : vector<16x256xf32>
    %3 = tpu.matmul %2, %1, %cst {dimension_numbers = #tpu.dot_dimension_numbers<[1], [0], [0], [1], [0, 0, 1, 1], [], []>} : vector<16x16xbf16>, vector<16x256xbf16>, vector<16x256xf32> -> vector<16x256xf32>
    %c0_4 = arith.constant 0 : index
    %c0_5 = arith.constant 0 : index
    %4 = vector.load %arg4[%c0_4, %c0_5] : memref<16x1xf32, #tpu.memory_space<vmem>>, vector<16x1xf32>
    %5 = vector.broadcast %4 : vector<16x1xf32> to vector<16x256xf32>
    %6 = arith.addf %3, %5 : vector<16x256xf32>
    %cst_6 = arith.constant 0.000000e+00 : f32
    %7 = vector.broadcast %cst_6 : f32 to vector<16x256xf32>
    %8 = arith.cmpf ogt, %6, %7 : vector<16x256xf32>
    %cst_7 = arith.constant 1.000000e-01 : f32
    %9 = vector.broadcast %cst_7 : f32 to vector<16x256xf32>
    %10 = arith.mulf %9, %6 : vector<16x256xf32>
    %11 = arith.select %8, %6, %10 : vector<16x256xi1>, vector<16x256xf32>
    %12 = vector.extract_strided_slice %11 {offsets = [0, 0], sizes = [8, 256], strides = [1, 1]} : vector<16x256xf32> to vector<8x256xf32>
    %13 = arith.truncf %12 : vector<8x256xf32> to vector<8x256xbf16>
    %14 = vector.extract_strided_slice %11 {offsets = [8, 0], sizes = [8, 256], strides = [1, 1]} : vector<16x256xf32> to vector<8x256xf32>
    %c0_8 = arith.constant 0 : index
    %c0_9 = arith.constant 0 : index
    %c0_10 = arith.constant 0 : index
    %15 = vector.load %arg2[%c0_8, %c0_9, %c0_10] : memref<9x1x256xf32, #tpu.memory_space<vmem>>, vector<1x1x256xf32>
    %16 = vector.shape_cast %15 : vector<1x1x256xf32> to vector<1x256xf32>
    %cst_11 = arith.constant 0.000000e+00 : f32
    %17 = vector.broadcast %cst_11 : f32 to vector<1x256xf32>
    %18 = arith.cmpf one, %16, %17 : vector<1x256xf32>
    %c1 = arith.constant 1 : index
    %c0_12 = arith.constant 0 : index
    %c0_13 = arith.constant 0 : index
    %19 = vector.load %arg2[%c1, %c0_12, %c0_13] : memref<9x1x256xf32, #tpu.memory_space<vmem>>, vector<1x1x256xf32>
    %20 = vector.shape_cast %19 : vector<1x1x256xf32> to vector<1x256xf32>
    %cst_14 = arith.constant 0.000000e+00 : f32
    %21 = vector.broadcast %cst_14 : f32 to vector<1x256xf32>
    %22 = arith.cmpf one, %20, %21 : vector<1x256xf32>
    %c2 = arith.constant 2 : index
    %c0_15 = arith.constant 0 : index
    %c0_16 = arith.constant 0 : index
    %23 = vector.load %arg2[%c2, %c0_15, %c0_16] : memref<9x1x256xf32, #tpu.memory_space<vmem>>, vector<1x1x256xf32>
    %24 = vector.shape_cast %23 : vector<1x1x256xf32> to vector<1x256xf32>
    %cst_17 = arith.constant 0.000000e+00 : f32
    %25 = vector.broadcast %cst_17 : f32 to vector<1x256xf32>
    %26 = arith.cmpf one, %24, %25 : vector<1x256xf32>
    %c3 = arith.constant 3 : index
    %c0_18 = arith.constant 0 : index
    %c0_19 = arith.constant 0 : index
    %27 = vector.load %arg2[%c3, %c0_18, %c0_19] : memref<9x1x256xf32, #tpu.memory_space<vmem>>, vector<1x1x256xf32>
    %28 = vector.shape_cast %27 : vector<1x1x256xf32> to vector<1x256xf32>
    %cst_20 = arith.constant 0.000000e+00 : f32
    %29 = vector.broadcast %cst_20 : f32 to vector<1x256xf32>
    %30 = arith.cmpf one, %28, %29 : vector<1x256xf32>
    %c5 = arith.constant 5 : index
    %c0_21 = arith.constant 0 : index
    %c0_22 = arith.constant 0 : index
    %31 = vector.load %arg2[%c5, %c0_21, %c0_22] : memref<9x1x256xf32, #tpu.memory_space<vmem>>, vector<1x1x256xf32>
    %32 = vector.shape_cast %31 : vector<1x1x256xf32> to vector<1x256xf32>
    %cst_23 = arith.constant 0.000000e+00 : f32
    %33 = vector.broadcast %cst_23 : f32 to vector<1x256xf32>
    %34 = arith.cmpf one, %32, %33 : vector<1x256xf32>
    %c6 = arith.constant 6 : index
    %c0_24 = arith.constant 0 : index
    %c0_25 = arith.constant 0 : index
    %35 = vector.load %arg2[%c6, %c0_24, %c0_25] : memref<9x1x256xf32, #tpu.memory_space<vmem>>, vector<1x1x256xf32>
    %36 = vector.shape_cast %35 : vector<1x1x256xf32> to vector<1x256xf32>
    %cst_26 = arith.constant 0.000000e+00 : f32
    %37 = vector.broadcast %cst_26 : f32 to vector<1x256xf32>
    %38 = arith.cmpf one, %36, %37 : vector<1x256xf32>
    %c7 = arith.constant 7 : index
    %c0_27 = arith.constant 0 : index
    %c0_28 = arith.constant 0 : index
    %39 = vector.load %arg2[%c7, %c0_27, %c0_28] : memref<9x1x256xf32, #tpu.memory_space<vmem>>, vector<1x1x256xf32>
    %40 = vector.shape_cast %39 : vector<1x1x256xf32> to vector<1x256xf32>
    %cst_29 = arith.constant 0.000000e+00 : f32
    %41 = vector.broadcast %cst_29 : f32 to vector<1x256xf32>
    %42 = arith.cmpf one, %40, %41 : vector<1x256xf32>
    %c8 = arith.constant 8 : index
    %c0_30 = arith.constant 0 : index
    %c0_31 = arith.constant 0 : index
    %43 = vector.load %arg2[%c8, %c0_30, %c0_31] : memref<9x1x256xf32, #tpu.memory_space<vmem>>, vector<1x1x256xf32>
    %44 = vector.shape_cast %43 : vector<1x1x256xf32> to vector<1x256xf32>
    %cst_32 = arith.constant 0.000000e+00 : f32
    %45 = vector.broadcast %cst_32 : f32 to vector<1x256xf32>
    %46 = arith.cmpf one, %44, %45 : vector<1x256xf32>
    %c0_33 = arith.constant 0 : index
    %c0_34 = arith.constant 0 : index
    %c0_35 = arith.constant 0 : index
    %47 = vector.load %arg5[%c0_33, %c0_34, %c0_35] : memref<2x8x8xbf16, #tpu.memory_space<vmem>>, vector<1x8x8xbf16>
    %48 = vector.shape_cast %47 : vector<1x8x8xbf16> to vector<8x8xbf16>
    %49 = arith.truncf %14 : vector<8x256xf32> to vector<8x256xbf16>
    %cst_36 = arith.constant dense<0.000000e+00> : vector<8x256xf32>
    %50 = tpu.matmul %48, %49, %cst_36 {dimension_numbers = #tpu.dot_dimension_numbers<[1], [0], [0], [1], [0, 0, 1, 1], [], []>} : vector<8x8xbf16>, vector<8x256xbf16>, vector<8x256xf32> -> vector<8x256xf32>
    %c0_37 = arith.constant 0 : index
    %c0_38 = arith.constant 0 : index
    %c0_39 = arith.constant 0 : index
    %51 = vector.load %arg6[%c0_37, %c0_38, %c0_39] : memref<2x8x1xf32, #tpu.memory_space<vmem>>, vector<1x8x1xf32>
    %52 = vector.shape_cast %51 : vector<1x8x1xf32> to vector<8x1xf32>
    %53 = vector.broadcast %52 : vector<8x1xf32> to vector<8x256xf32>
    %54 = arith.addf %50, %53 : vector<8x256xf32>
    %cst_40 = arith.constant 0.000000e+00 : f32
    %55 = vector.broadcast %cst_40 : f32 to vector<8x256xf32>
    %56 = arith.cmpf ogt, %54, %55 : vector<8x256xf32>
    %cst_41 = arith.constant 1.000000e-01 : f32
    %57 = vector.broadcast %cst_41 : f32 to vector<8x256xf32>
    %58 = arith.mulf %57, %54 : vector<8x256xf32>
    %59 = arith.select %56, %54, %58 : vector<8x256xi1>, vector<8x256xf32>
    %60 = vector.extract_strided_slice %59 {offsets = [0, 239], sizes = [8, 17], strides = [1, 1]} : vector<8x256xf32> to vector<8x17xf32>
    %61 = vector.extract_strided_slice %59 {offsets = [0, 0], sizes = [8, 239], strides = [1, 1]} : vector<8x256xf32> to vector<8x239xf32>
    %62 = tpu.concatenate %60, %61 in 1 : vector<8x17xf32>, vector<8x239xf32> -> vector<8x256xf32>
    %cst_42 = arith.constant 0.000000e+00 : f32
    %63 = vector.shape_cast %18 : vector<1x256xi1> to vector<1x256xi1>
    %64 = vector.broadcast %63 : vector<1x256xi1> to vector<8x256xi1>
    %65 = vector.broadcast %cst_42 : f32 to vector<8x256xf32>
    %66 = arith.select %64, %62, %65 : vector<8x256xi1>, vector<8x256xf32>
    %67 = arith.truncf %66 : vector<8x256xf32> to vector<8x256xbf16>
    %68 = vector.extract_strided_slice %59 {offsets = [0, 240], sizes = [8, 16], strides = [1, 1]} : vector<8x256xf32> to vector<8x16xf32>
    %69 = vector.extract_strided_slice %59 {offsets = [0, 0], sizes = [8, 240], strides = [1, 1]} : vector<8x256xf32> to vector<8x240xf32>
    %70 = tpu.concatenate %68, %69 in 1 : vector<8x16xf32>, vector<8x240xf32> -> vector<8x256xf32>
    %cst_43 = arith.constant 0.000000e+00 : f32
    %71 = vector.shape_cast %22 : vector<1x256xi1> to vector<1x256xi1>
    %72 = vector.broadcast %71 : vector<1x256xi1> to vector<8x256xi1>
    %73 = vector.broadcast %cst_43 : f32 to vector<8x256xf32>
    %74 = arith.select %72, %70, %73 : vector<8x256xi1>, vector<8x256xf32>
    %75 = arith.truncf %74 : vector<8x256xf32> to vector<8x256xbf16>
    %76 = vector.extract_strided_slice %59 {offsets = [0, 241], sizes = [8, 15], strides = [1, 1]} : vector<8x256xf32> to vector<8x15xf32>
    %77 = vector.extract_strided_slice %59 {offsets = [0, 0], sizes = [8, 241], strides = [1, 1]} : vector<8x256xf32> to vector<8x241xf32>
    %78 = tpu.concatenate %76, %77 in 1 : vector<8x15xf32>, vector<8x241xf32> -> vector<8x256xf32>
    %cst_44 = arith.constant 0.000000e+00 : f32
    %79 = vector.shape_cast %26 : vector<1x256xi1> to vector<1x256xi1>
    %80 = vector.broadcast %79 : vector<1x256xi1> to vector<8x256xi1>
    %81 = vector.broadcast %cst_44 : f32 to vector<8x256xf32>
    %82 = arith.select %80, %78, %81 : vector<8x256xi1>, vector<8x256xf32>
    %83 = arith.truncf %82 : vector<8x256xf32> to vector<8x256xbf16>
    %84 = vector.extract_strided_slice %59 {offsets = [0, 255], sizes = [8, 1], strides = [1, 1]} : vector<8x256xf32> to vector<8x1xf32>
    %85 = vector.extract_strided_slice %59 {offsets = [0, 0], sizes = [8, 255], strides = [1, 1]} : vector<8x256xf32> to vector<8x255xf32>
    %86 = tpu.concatenate %84, %85 in 1 : vector<8x1xf32>, vector<8x255xf32> -> vector<8x256xf32>
    %cst_45 = arith.constant 0.000000e+00 : f32
    %87 = vector.shape_cast %30 : vector<1x256xi1> to vector<1x256xi1>
    %88 = vector.broadcast %87 : vector<1x256xi1> to vector<8x256xi1>
    %89 = vector.broadcast %cst_45 : f32 to vector<8x256xf32>
    %90 = arith.select %88, %86, %89 : vector<8x256xi1>, vector<8x256xf32>
    %91 = arith.truncf %90 : vector<8x256xf32> to vector<8x256xbf16>
    %92 = arith.truncf %59 : vector<8x256xf32> to vector<8x256xbf16>
    %93 = vector.extract_strided_slice %59 {offsets = [0, 1], sizes = [8, 255], strides = [1, 1]} : vector<8x256xf32> to vector<8x255xf32>
    %94 = vector.extract_strided_slice %59 {offsets = [0, 0], sizes = [8, 1], strides = [1, 1]} : vector<8x256xf32> to vector<8x1xf32>
    %95 = tpu.concatenate %93, %94 in 1 : vector<8x255xf32>, vector<8x1xf32> -> vector<8x256xf32>
    %cst_46 = arith.constant 0.000000e+00 : f32
    %96 = vector.shape_cast %34 : vector<1x256xi1> to vector<1x256xi1>
    %97 = vector.broadcast %96 : vector<1x256xi1> to vector<8x256xi1>
    %98 = vector.broadcast %cst_46 : f32 to vector<8x256xf32>
    %99 = arith.select %97, %95, %98 : vector<8x256xi1>, vector<8x256xf32>
    %100 = arith.truncf %99 : vector<8x256xf32> to vector<8x256xbf16>
    %101 = vector.extract_strided_slice %59 {offsets = [0, 15], sizes = [8, 241], strides = [1, 1]} : vector<8x256xf32> to vector<8x241xf32>
    %102 = vector.extract_strided_slice %59 {offsets = [0, 0], sizes = [8, 15], strides = [1, 1]} : vector<8x256xf32> to vector<8x15xf32>
    %103 = tpu.concatenate %101, %102 in 1 : vector<8x241xf32>, vector<8x15xf32> -> vector<8x256xf32>
    %cst_47 = arith.constant 0.000000e+00 : f32
    %104 = vector.shape_cast %38 : vector<1x256xi1> to vector<1x256xi1>
    %105 = vector.broadcast %104 : vector<1x256xi1> to vector<8x256xi1>
    %106 = vector.broadcast %cst_47 : f32 to vector<8x256xf32>
    %107 = arith.select %105, %103, %106 : vector<8x256xi1>, vector<8x256xf32>
    %108 = arith.truncf %107 : vector<8x256xf32> to vector<8x256xbf16>
    %109 = vector.extract_strided_slice %59 {offsets = [0, 16], sizes = [8, 240], strides = [1, 1]} : vector<8x256xf32> to vector<8x240xf32>
    %110 = vector.extract_strided_slice %59 {offsets = [0, 0], sizes = [8, 16], strides = [1, 1]} : vector<8x256xf32> to vector<8x16xf32>
    %111 = tpu.concatenate %109, %110 in 1 : vector<8x240xf32>, vector<8x16xf32> -> vector<8x256xf32>
    %cst_48 = arith.constant 0.000000e+00 : f32
    %112 = vector.shape_cast %42 : vector<1x256xi1> to vector<1x256xi1>
    %113 = vector.broadcast %112 : vector<1x256xi1> to vector<8x256xi1>
    %114 = vector.broadcast %cst_48 : f32 to vector<8x256xf32>
    %115 = arith.select %113, %111, %114 : vector<8x256xi1>, vector<8x256xf32>
    %116 = arith.truncf %115 : vector<8x256xf32> to vector<8x256xbf16>
    %117 = vector.extract_strided_slice %59 {offsets = [0, 17], sizes = [8, 239], strides = [1, 1]} : vector<8x256xf32> to vector<8x239xf32>
    %118 = vector.extract_strided_slice %59 {offsets = [0, 0], sizes = [8, 17], strides = [1, 1]} : vector<8x256xf32> to vector<8x17xf32>
    %119 = tpu.concatenate %117, %118 in 1 : vector<8x239xf32>, vector<8x17xf32> -> vector<8x256xf32>
    %cst_49 = arith.constant 0.000000e+00 : f32
    %120 = vector.shape_cast %46 : vector<1x256xi1> to vector<1x256xi1>
    %121 = vector.broadcast %120 : vector<1x256xi1> to vector<8x256xi1>
    %122 = vector.broadcast %cst_49 : f32 to vector<8x256xf32>
    %123 = arith.select %121, %119, %122 : vector<8x256xi1>, vector<8x256xf32>
    %124 = arith.truncf %123 : vector<8x256xf32> to vector<8x256xbf16>
    %125 = tpu.concatenate %67, %75, %83, %91, %92, %100, %108, %116, %124 in 0 : vector<8x256xbf16>, vector<8x256xbf16>, vector<8x256xbf16>, vector<8x256xbf16>, vector<8x256xbf16>, vector<8x256xbf16>, vector<8x256xbf16>, vector<8x256xbf16>, vector<8x256xbf16> -> vector<72x256xbf16>
    %c0_50 = arith.constant 0 : index
    %c0_51 = arith.constant 0 : index
    %c0_52 = arith.constant 0 : index
    %126 = vector.load %arg7[%c0_50, %c0_51, %c0_52] : memref<2x8x72xbf16, #tpu.memory_space<vmem>>, vector<1x8x72xbf16>
    %127 = vector.shape_cast %126 : vector<1x8x72xbf16> to vector<8x72xbf16>
    %cst_53 = arith.constant dense<0.000000e+00> : vector<8x256xf32>
    %128 = tpu.matmul %127, %125, %cst_53 {dimension_numbers = #tpu.dot_dimension_numbers<[1], [0], [0], [1], [0, 0, 1, 1], [], []>} : vector<8x72xbf16>, vector<72x256xbf16>, vector<8x256xf32> -> vector<8x256xf32>
    %c0_54 = arith.constant 0 : index
    %c0_55 = arith.constant 0 : index
    %c0_56 = arith.constant 0 : index
    %129 = vector.load %arg8[%c0_54, %c0_55, %c0_56] : memref<2x8x1xf32, #tpu.memory_space<vmem>>, vector<1x8x1xf32>
    %130 = vector.shape_cast %129 : vector<1x8x1xf32> to vector<8x1xf32>
    %131 = vector.broadcast %130 : vector<8x1xf32> to vector<8x256xf32>
    %132 = arith.addf %128, %131 : vector<8x256xf32>
    %133 = arith.addf %14, %132 : vector<8x256xf32>
    %cst_57 = arith.constant 0.000000e+00 : f32
    %134 = vector.broadcast %cst_57 : f32 to vector<8x256xf32>
    %135 = arith.cmpf ogt, %133, %134 : vector<8x256xf32>
    %cst_58 = arith.constant 1.000000e-01 : f32
    %136 = vector.broadcast %cst_58 : f32 to vector<8x256xf32>
    %137 = arith.mulf %136, %133 : vector<8x256xf32>
    %138 = arith.select %135, %133, %137 : vector<8x256xi1>, vector<8x256xf32>
    %c1_59 = arith.constant 1 : index
    %c0_60 = arith.constant 0 : index
    %c0_61 = arith.constant 0 : index
    %139 = vector.load %arg5[%c1_59, %c0_60, %c0_61] : memref<2x8x8xbf16, #tpu.memory_space<vmem>>, vector<1x8x8xbf16>
    %140 = vector.shape_cast %139 : vector<1x8x8xbf16> to vector<8x8xbf16>
    %141 = arith.truncf %138 : vector<8x256xf32> to vector<8x256xbf16>
    %cst_62 = arith.constant dense<0.000000e+00> : vector<8x256xf32>
    %142 = tpu.matmul %140, %141, %cst_62 {dimension_numbers = #tpu.dot_dimension_numbers<[1], [0], [0], [1], [0, 0, 1, 1], [], []>} : vector<8x8xbf16>, vector<8x256xbf16>, vector<8x256xf32> -> vector<8x256xf32>
    %c1_63 = arith.constant 1 : index
    %c0_64 = arith.constant 0 : index
    %c0_65 = arith.constant 0 : index
    %143 = vector.load %arg6[%c1_63, %c0_64, %c0_65] : memref<2x8x1xf32, #tpu.memory_space<vmem>>, vector<1x8x1xf32>
    %144 = vector.shape_cast %143 : vector<1x8x1xf32> to vector<8x1xf32>
    %145 = vector.broadcast %144 : vector<8x1xf32> to vector<8x256xf32>
    %146 = arith.addf %142, %145 : vector<8x256xf32>
    %cst_66 = arith.constant 0.000000e+00 : f32
    %147 = vector.broadcast %cst_66 : f32 to vector<8x256xf32>
    %148 = arith.cmpf ogt, %146, %147 : vector<8x256xf32>
    %cst_67 = arith.constant 1.000000e-01 : f32
    %149 = vector.broadcast %cst_67 : f32 to vector<8x256xf32>
    %150 = arith.mulf %149, %146 : vector<8x256xf32>
    %151 = arith.select %148, %146, %150 : vector<8x256xi1>, vector<8x256xf32>
    %152 = vector.extract_strided_slice %151 {offsets = [0, 239], sizes = [8, 17], strides = [1, 1]} : vector<8x256xf32> to vector<8x17xf32>
    %153 = vector.extract_strided_slice %151 {offsets = [0, 0], sizes = [8, 239], strides = [1, 1]} : vector<8x256xf32> to vector<8x239xf32>
    %154 = tpu.concatenate %152, %153 in 1 : vector<8x17xf32>, vector<8x239xf32> -> vector<8x256xf32>
    %cst_68 = arith.constant 0.000000e+00 : f32
    %155 = vector.shape_cast %18 : vector<1x256xi1> to vector<1x256xi1>
    %156 = vector.broadcast %155 : vector<1x256xi1> to vector<8x256xi1>
    %157 = vector.broadcast %cst_68 : f32 to vector<8x256xf32>
    %158 = arith.select %156, %154, %157 : vector<8x256xi1>, vector<8x256xf32>
    %159 = arith.truncf %158 : vector<8x256xf32> to vector<8x256xbf16>
    %160 = vector.extract_strided_slice %151 {offsets = [0, 240], sizes = [8, 16], strides = [1, 1]} : vector<8x256xf32> to vector<8x16xf32>
    %161 = vector.extract_strided_slice %151 {offsets = [0, 0], sizes = [8, 240], strides = [1, 1]} : vector<8x256xf32> to vector<8x240xf32>
    %162 = tpu.concatenate %160, %161 in 1 : vector<8x16xf32>, vector<8x240xf32> -> vector<8x256xf32>
    %cst_69 = arith.constant 0.000000e+00 : f32
    %163 = vector.shape_cast %22 : vector<1x256xi1> to vector<1x256xi1>
    %164 = vector.broadcast %163 : vector<1x256xi1> to vector<8x256xi1>
    %165 = vector.broadcast %cst_69 : f32 to vector<8x256xf32>
    %166 = arith.select %164, %162, %165 : vector<8x256xi1>, vector<8x256xf32>
    %167 = arith.truncf %166 : vector<8x256xf32> to vector<8x256xbf16>
    %168 = vector.extract_strided_slice %151 {offsets = [0, 241], sizes = [8, 15], strides = [1, 1]} : vector<8x256xf32> to vector<8x15xf32>
    %169 = vector.extract_strided_slice %151 {offsets = [0, 0], sizes = [8, 241], strides = [1, 1]} : vector<8x256xf32> to vector<8x241xf32>
    %170 = tpu.concatenate %168, %169 in 1 : vector<8x15xf32>, vector<8x241xf32> -> vector<8x256xf32>
    %cst_70 = arith.constant 0.000000e+00 : f32
    %171 = vector.shape_cast %26 : vector<1x256xi1> to vector<1x256xi1>
    %172 = vector.broadcast %171 : vector<1x256xi1> to vector<8x256xi1>
    %173 = vector.broadcast %cst_70 : f32 to vector<8x256xf32>
    %174 = arith.select %172, %170, %173 : vector<8x256xi1>, vector<8x256xf32>
    %175 = arith.truncf %174 : vector<8x256xf32> to vector<8x256xbf16>
    %176 = vector.extract_strided_slice %151 {offsets = [0, 255], sizes = [8, 1], strides = [1, 1]} : vector<8x256xf32> to vector<8x1xf32>
    %177 = vector.extract_strided_slice %151 {offsets = [0, 0], sizes = [8, 255], strides = [1, 1]} : vector<8x256xf32> to vector<8x255xf32>
    %178 = tpu.concatenate %176, %177 in 1 : vector<8x1xf32>, vector<8x255xf32> -> vector<8x256xf32>
    %cst_71 = arith.constant 0.000000e+00 : f32
    %179 = vector.shape_cast %30 : vector<1x256xi1> to vector<1x256xi1>
    %180 = vector.broadcast %179 : vector<1x256xi1> to vector<8x256xi1>
    %181 = vector.broadcast %cst_71 : f32 to vector<8x256xf32>
    %182 = arith.select %180, %178, %181 : vector<8x256xi1>, vector<8x256xf32>
    %183 = arith.truncf %182 : vector<8x256xf32> to vector<8x256xbf16>
    %184 = arith.truncf %151 : vector<8x256xf32> to vector<8x256xbf16>
    %185 = vector.extract_strided_slice %151 {offsets = [0, 1], sizes = [8, 255], strides = [1, 1]} : vector<8x256xf32> to vector<8x255xf32>
    %186 = vector.extract_strided_slice %151 {offsets = [0, 0], sizes = [8, 1], strides = [1, 1]} : vector<8x256xf32> to vector<8x1xf32>
    %187 = tpu.concatenate %185, %186 in 1 : vector<8x255xf32>, vector<8x1xf32> -> vector<8x256xf32>
    %cst_72 = arith.constant 0.000000e+00 : f32
    %188 = vector.shape_cast %34 : vector<1x256xi1> to vector<1x256xi1>
    %189 = vector.broadcast %188 : vector<1x256xi1> to vector<8x256xi1>
    %190 = vector.broadcast %cst_72 : f32 to vector<8x256xf32>
    %191 = arith.select %189, %187, %190 : vector<8x256xi1>, vector<8x256xf32>
    %192 = arith.truncf %191 : vector<8x256xf32> to vector<8x256xbf16>
    %193 = vector.extract_strided_slice %151 {offsets = [0, 15], sizes = [8, 241], strides = [1, 1]} : vector<8x256xf32> to vector<8x241xf32>
    %194 = vector.extract_strided_slice %151 {offsets = [0, 0], sizes = [8, 15], strides = [1, 1]} : vector<8x256xf32> to vector<8x15xf32>
    %195 = tpu.concatenate %193, %194 in 1 : vector<8x241xf32>, vector<8x15xf32> -> vector<8x256xf32>
    %cst_73 = arith.constant 0.000000e+00 : f32
    %196 = vector.shape_cast %38 : vector<1x256xi1> to vector<1x256xi1>
    %197 = vector.broadcast %196 : vector<1x256xi1> to vector<8x256xi1>
    %198 = vector.broadcast %cst_73 : f32 to vector<8x256xf32>
    %199 = arith.select %197, %195, %198 : vector<8x256xi1>, vector<8x256xf32>
    %200 = arith.truncf %199 : vector<8x256xf32> to vector<8x256xbf16>
    %201 = vector.extract_strided_slice %151 {offsets = [0, 16], sizes = [8, 240], strides = [1, 1]} : vector<8x256xf32> to vector<8x240xf32>
    %202 = vector.extract_strided_slice %151 {offsets = [0, 0], sizes = [8, 16], strides = [1, 1]} : vector<8x256xf32> to vector<8x16xf32>
    %203 = tpu.concatenate %201, %202 in 1 : vector<8x240xf32>, vector<8x16xf32> -> vector<8x256xf32>
    %cst_74 = arith.constant 0.000000e+00 : f32
    %204 = vector.shape_cast %42 : vector<1x256xi1> to vector<1x256xi1>
    %205 = vector.broadcast %204 : vector<1x256xi1> to vector<8x256xi1>
    %206 = vector.broadcast %cst_74 : f32 to vector<8x256xf32>
    %207 = arith.select %205, %203, %206 : vector<8x256xi1>, vector<8x256xf32>
    %208 = arith.truncf %207 : vector<8x256xf32> to vector<8x256xbf16>
    %209 = vector.extract_strided_slice %151 {offsets = [0, 17], sizes = [8, 239], strides = [1, 1]} : vector<8x256xf32> to vector<8x239xf32>
    %210 = vector.extract_strided_slice %151 {offsets = [0, 0], sizes = [8, 17], strides = [1, 1]} : vector<8x256xf32> to vector<8x17xf32>
    %211 = tpu.concatenate %209, %210 in 1 : vector<8x239xf32>, vector<8x17xf32> -> vector<8x256xf32>
    %cst_75 = arith.constant 0.000000e+00 : f32
    %212 = vector.shape_cast %46 : vector<1x256xi1> to vector<1x256xi1>
    %213 = vector.broadcast %212 : vector<1x256xi1> to vector<8x256xi1>
    %214 = vector.broadcast %cst_75 : f32 to vector<8x256xf32>
    %215 = arith.select %213, %211, %214 : vector<8x256xi1>, vector<8x256xf32>
    %216 = arith.truncf %215 : vector<8x256xf32> to vector<8x256xbf16>
    %217 = tpu.concatenate %159, %167, %175, %183, %184, %192, %200, %208, %216 in 0 : vector<8x256xbf16>, vector<8x256xbf16>, vector<8x256xbf16>, vector<8x256xbf16>, vector<8x256xbf16>, vector<8x256xbf16>, vector<8x256xbf16>, vector<8x256xbf16>, vector<8x256xbf16> -> vector<72x256xbf16>
    %c1_76 = arith.constant 1 : index
    %c0_77 = arith.constant 0 : index
    %c0_78 = arith.constant 0 : index
    %218 = vector.load %arg7[%c1_76, %c0_77, %c0_78] : memref<2x8x72xbf16, #tpu.memory_space<vmem>>, vector<1x8x72xbf16>
    %219 = vector.shape_cast %218 : vector<1x8x72xbf16> to vector<8x72xbf16>
    %cst_79 = arith.constant dense<0.000000e+00> : vector<8x256xf32>
    %220 = tpu.matmul %219, %217, %cst_79 {dimension_numbers = #tpu.dot_dimension_numbers<[1], [0], [0], [1], [0, 0, 1, 1], [], []>} : vector<8x72xbf16>, vector<72x256xbf16>, vector<8x256xf32> -> vector<8x256xf32>
    %c1_80 = arith.constant 1 : index
    %c0_81 = arith.constant 0 : index
    %c0_82 = arith.constant 0 : index
    %221 = vector.load %arg8[%c1_80, %c0_81, %c0_82] : memref<2x8x1xf32, #tpu.memory_space<vmem>>, vector<1x8x1xf32>
    %222 = vector.shape_cast %221 : vector<1x8x1xf32> to vector<8x1xf32>
    %223 = vector.broadcast %222 : vector<8x1xf32> to vector<8x256xf32>
    %224 = arith.addf %220, %223 : vector<8x256xf32>
    %225 = arith.addf %138, %224 : vector<8x256xf32>
    %cst_83 = arith.constant 0.000000e+00 : f32
    %226 = vector.broadcast %cst_83 : f32 to vector<8x256xf32>
    %227 = arith.cmpf ogt, %225, %226 : vector<8x256xf32>
    %cst_84 = arith.constant 1.000000e-01 : f32
    %228 = vector.broadcast %cst_84 : f32 to vector<8x256xf32>
    %229 = arith.mulf %228, %225 : vector<8x256xf32>
    %230 = arith.select %227, %225, %229 : vector<8x256xi1>, vector<8x256xf32>
    %231 = arith.truncf %230 : vector<8x256xf32> to vector<8x256xbf16>
    %232 = tpu.concatenate %13, %231 in 0 : vector<8x256xbf16>, vector<8x256xbf16> -> vector<16x256xbf16>
    %c0_85 = arith.constant 0 : index
    %c0_86 = arith.constant 0 : index
    %233 = vector.load %arg9[%c0_85, %c0_86] : memref<16x16xbf16, #tpu.memory_space<vmem>>, vector<16x16xbf16>
    %cst_87 = arith.constant dense<0.000000e+00> : vector<16x256xf32>
    %234 = tpu.matmul %233, %232, %cst_87 {dimension_numbers = #tpu.dot_dimension_numbers<[1], [0], [0], [1], [0, 0, 1, 1], [], []>} : vector<16x16xbf16>, vector<16x256xbf16>, vector<16x256xf32> -> vector<16x256xf32>
    %c0_88 = arith.constant 0 : index
    %c0_89 = arith.constant 0 : index
    %235 = vector.load %arg10[%c0_88, %c0_89] : memref<16x1xf32, #tpu.memory_space<vmem>>, vector<16x1xf32>
    %236 = vector.broadcast %235 : vector<16x1xf32> to vector<16x256xf32>
    %237 = arith.addf %234, %236 : vector<16x256xf32>
    %cst_90 = arith.constant 0.000000e+00 : f32
    %238 = vector.broadcast %cst_90 : f32 to vector<16x256xf32>
    %239 = arith.cmpf ogt, %237, %238 : vector<16x256xf32>
    %cst_91 = arith.constant 1.000000e-01 : f32
    %240 = vector.broadcast %cst_91 : f32 to vector<16x256xf32>
    %241 = arith.mulf %240, %237 : vector<16x256xf32>
    %242 = arith.select %239, %237, %241 : vector<16x256xi1>, vector<16x256xf32>
    %c0_92 = arith.constant 0 : index
    %c0_93 = arith.constant 0 : index
    %c0_94 = arith.constant 0 : index
    %243 = vector.load %arg11[%c0_92, %c0_93, %c0_94] : memref<1x16x256xf32, #tpu.memory_space<vmem>>, vector<1x16x256xf32>
    %244 = vector.shape_cast %243 : vector<1x16x256xf32> to vector<16x256xf32>
    %245 = vector.shape_cast %242 : vector<16x256xf32> to vector<1x16x256xf32>
    tpu.vector_store %arg11[%c0_92, %c0_93, %c0_94], %245 {strides = array<i32>} : memref<1x16x256xf32, #tpu.memory_space<vmem>>, vector<1x16x256xf32>,
    return
  }
  func.func @transform_0(%arg0: i32) -> (i32, i32, i32) {
    %c0_i32 = arith.constant 0 : i32
    %c0_i32_0 = arith.constant 0 : i32
    %c0_i32_1 = arith.constant 0 : i32
    return %arg0, %c0_i32, %c0_i32_0 : i32, i32, i32
  }
  func.func @transform_1(%arg0: i32) -> (i32, i32, i32) {
    %c0_i32 = arith.constant 0 : i32
    %c0_i32_0 = arith.constant 0 : i32
    %c0_i32_1 = arith.constant 0 : i32
    %c0_i32_2 = arith.constant 0 : i32
    return %c0_i32, %c0_i32_0, %c0_i32_1 : i32, i32, i32
  }
  func.func @transform_2(%arg0: i32) -> (i32, i32) {
    %c0_i32 = arith.constant 0 : i32
    %c0_i32_0 = arith.constant 0 : i32
    %c0_i32_1 = arith.constant 0 : i32
    return %c0_i32, %c0_i32_0 : i32, i32
  }
  func.func @transform_3(%arg0: i32) -> (i32, i32) {
    %c0_i32 = arith.constant 0 : i32
    %c0_i32_0 = arith.constant 0 : i32
    %c0_i32_1 = arith.constant 0 : i32
    return %c0_i32, %c0_i32_0 : i32, i32
  }
  func.func @transform_4(%arg0: i32) -> (i32, i32, i32) {
    %c0_i32 = arith.constant 0 : i32
    %c0_i32_0 = arith.constant 0 : i32
    %c0_i32_1 = arith.constant 0 : i32
    %c0_i32_2 = arith.constant 0 : i32
    return %c0_i32, %c0_i32_0, %c0_i32_1 : i32, i32, i32
  }
  func.func @transform_5(%arg0: i32) -> (i32, i32, i32) {
    %c0_i32 = arith.constant 0 : i32
    %c0_i32_0 = arith.constant 0 : i32
    %c0_i32_1 = arith.constant 0 : i32
    %c0_i32_2 = arith.constant 0 : i32
    return %c0_i32, %c0_i32_0, %c0_i32_1 : i32, i32, i32
  }
  func.func @transform_6(%arg0: i32) -> (i32, i32, i32) {
    %c0_i32 = arith.constant 0 : i32
    %c0_i32_0 = arith.constant 0 : i32
    %c0_i32_1 = arith.constant 0 : i32
    %c0_i32_2 = arith.constant 0 : i32
    return %c0_i32, %c0_i32_0, %c0_i32_1 : i32, i32, i32
  }
  func.func @transform_7(%arg0: i32) -> (i32, i32, i32) {
    %c0_i32 = arith.constant 0 : i32
    %c0_i32_0 = arith.constant 0 : i32
    %c0_i32_1 = arith.constant 0 : i32
    %c0_i32_2 = arith.constant 0 : i32
    return %c0_i32, %c0_i32_0, %c0_i32_1 : i32, i32, i32
  }
  func.func @transform_8(%arg0: i32) -> (i32, i32) {
    %c0_i32 = arith.constant 0 : i32
    %c0_i32_0 = arith.constant 0 : i32
    %c0_i32_1 = arith.constant 0 : i32
    return %c0_i32, %c0_i32_0 : i32, i32
  }
  func.func @transform_9(%arg0: i32) -> (i32, i32) {
    %c0_i32 = arith.constant 0 : i32
    %c0_i32_0 = arith.constant 0 : i32
    %c0_i32_1 = arith.constant 0 : i32
    return %c0_i32, %c0_i32_0 : i32, i32
  }
  func.func @transform_10(%arg0: i32) -> (i32, i32, i32) {
    %c0_i32 = arith.constant 0 : i32
    %c0_i32_0 = arith.constant 0 : i32
    %c0_i32_1 = arith.constant 0 : i32
    return %arg0, %c0_i32, %c0_i32_0 : i32, i32, i32
  }
}

</mosaic_0001>

<bundles_post_ra>
// kernel: tpu_custom_call.1
= control target key start
LH: loop header
LB: loop body
LE: loop exit
PB: predicated region body
PF: predicated region fallthrough
CT: control target
= control target key end

     0   :  { %6 = vsyncpa [#allocation3], 0  ;;  %s137_s0 = inlined_call_operand.hbm [shape: f32[8,256], index: 0, kind: input, shape index: {}]   ;;  %s138_s1 = inlined_call_operand.hbm [shape: f32[8,256], index: 1, kind: output, shape index: {}]  }
   0x1   :  { %7 = vsyncpa [#allocation4], 0  ;;  %s100_s6 = smov [#allocation2]   ;;  %s52_s10 = scalar_lea.hbm %s137_s0, 256 }
   0x2   :  { %s14_s7 = sshll.u32 %s100_s6, 4  ;;  %p53_p0 = scmp.ne.s32.totalorder %s137_s0, %s52_s10  ;;  %s15_s7 = int_to_ptr.vmem [resolvable:$true] %s14_s7 }
   0x3   :  { %p56_p1 = scmp.lt.u32.totalorder %s52_s10, %s137_s0 }
   0x5   :  { %p58_p2 = pnand %p56_p1, %p53_p0 }
   0x7   :  { %61 = shalt.err (!%p58_p2)
}
   0x8   :  { %s62_s15 = scalar_lea.vmem %s15_s7, 256  ;;  %p67_p4 = scmp.lt.s32.totalorder %s15_s7, %s15_s7 }
   0x9   :  { %p63_p3 = scmp.ne.s32.totalorder %s15_s7, %s62_s15  ;;  %p68_p5 = scmp.lt.s32.totalorder %s62_s15, %s62_s15 }
   0xb   :  { %p69_p6 = por %p68_p5, %p67_p4 }
   0xd   :  { %p70_p7 = pnand %p69_p6, %p63_p3 }
   0xf   :  { %73 = shalt.err (!%p70_p7)
}
  0x10   :  { %17 = dma.hbm_to_vmem [thread:$0]  %s137_s0, 256, %s15_s7, [#allocation3]  }
  0x11   :  { %96 = dma.done.wait [#allocation3], 256  }
  0x12   :  { %97 = vsyncadd [#allocation3], 4294967040  ;;  %v21_v0 = vld [vmem:[#allocation2] sm:$0xff]  ;;  %s101_s18 = smov 17   ;;  %v22_v1 = vld [vmem:[#allocation2 + $0x8] sm:$0xff]  ;;  %v27_v2 = vlaneseq  ;;  %s102_s19 = smov [#allocation5]  }
  0x13   :  { %23 = vrot.lane.b32.xlu0 %v21_v0, %s101_s18  ;;  %s40_s20 = sshll.u32 %s102_s19, 4  ;;  %s41_s20 = int_to_ptr.vmem [resolvable:$true] %s40_s20 }
  0x14   :  { %v28_v3 = vand.u32 127, %v27_v2  ;;  %s74_s0 = scalar_lea.vmem %s41_s20, 256  ;;  %p79_p9 = scmp.lt.s32.totalorder %s41_s20, %s41_s20 }
  0x15   :  { %p75_p8 = scmp.ne.s32.totalorder %s41_s20, %s74_s0  ;;  %p80_p10 = scmp.lt.s32.totalorder %s74_s0, %s74_s0 }
  0x16   :  { %vm29_vm0 = vcmp.lt.s32.totalorder %v28_v3, 17 }
  0x17   :  { %25 = vrot.lane.b32.xlu0 %v22_v1, %s101_s18  ;;  %p81_p11 = por %p80_p10, %p79_p9 }
  0x19   :  { %p82_p12 = pnand %p81_p11, %p75_p8 }
  0x85   :  { %v24_v4 = vpop.permute.xlu0 %23 }
  0x89   :  { %v26_v5 = vpop.permute.xlu0 %25 }
  0x8a   :  { %v30_v6 = vsel %vm29_vm0, %v24_v4, %v26_v5  ;;  %v31_v7 = vsel %vm29_vm0, %v26_v5, %v24_v4 }
  0x8b   :  { %32 = vst [vmem:[#allocation5] sm:$0xff] %v31_v7  ;;  %33 = vst [vmem:[#allocation5 + $0x8] sm:$0xff] %v30_v6 }
  0x8c   :  { %85 = shalt.err (!%p82_p12)
}
  0x8d   :  { %s86_s23 = scalar_lea.hbm %s138_s1, 256 }
  0x8e   :  { %p87_p13 = scmp.ne.s32.totalorder %s138_s1, %s86_s23  ;;  %p90_p0 = scmp.lt.u32.totalorder %s86_s23, %s138_s1 }
  0x90   :  { %p92_p1 = pnand %p90_p0, %p87_p13 }
  0x92   :  { %95 = shalt.err (!%p92_p1)
}
  0x93   :  { %43 = dma.vmem_to_hbm [thread:$0]  %s41_s20, 256, %s138_s1, [#allocation4]  }
  0x94   :  { %98 = dma.done.wait [#allocation4], 256  }
  0x95   :  { %99 = vsyncadd [#allocation4], 4294967040 }
  0x96   :  { %47 = vsyncpa [#allocation3], 1 }
  0x97   :  { %48 = vsyncpa [#allocation4], 1 }

// kernel: tpu_custom_call.1
= control target key start
LH: loop header
LB: loop body
LE: loop exit
PB: predicated region body
PF: predicated region fallthrough
CT: control target
= control target key end

     0   :  { %s2101_s0 = inlined_call_operand.vmem [shape: bf16[2,16,256], index: 0, kind: input, shape index: {}]   ;;  %s2102_s1 = inlined_call_operand.vmem [shape: f32[9,1,256], index: 1, kind: input, shape index: {}]   ;;  %s2103_s2 = inlined_call_operand.vmem [shape: bf16[16,16], index: 2, kind: input, shape index: {}]   ;;  %s2104_s3 = inlined_call_operand.vmem [shape: f32[16,1], index: 3, kind: input, shape index: {}]   ;;  %s2105_s4 = inlined_call_operand.vmem [shape: bf16[2,8,8], index: 4, kind: input, shape index: {}]   ;;  %s2106_s5 = inlined_call_operand.vmem [shape: f32[2,8,1], index: 5, kind: input, shape index: {}]   ;;  %s2107_s6 = inlined_call_operand.vmem [shape: bf16[2,8,72], index: 6, kind: input, shape index: {}]   ;;  %s2108_s7 = inlined_call_operand.vmem [shape: f32[2,8,1], index: 7, kind: input, shape index: {}]   ;;  %s2109_s8 = inlined_call_operand.vmem [shape: bf16[16,16], index: 8, kind: input, shape index: {}]   ;;  %s2110_s9 = inlined_call_operand.vmem [shape: f32[16,1], index: 9, kind: input, shape index: {}]   ;;  %s2111_s10 = inlined_call_operand.hbm [shape: f32[2,16,256], index: 10, kind: output, shape index: {}]  }
   0x1   :  { %2131 = sst [smem:[#allocation5_spill]] %s2101_s0 }
   0x2   :  { %15 = vsyncpa [#allocation3], 0 }
   0x3   :  { %17 = vsyncpa [#allocation3 + $0x1], 0  ;;  %s1624_s13 = smov 0   ;;  %s1626_s14 = smov 0  }
   0x4   :  { %s1628_s15 = smov 0   ;;  %s1630_s16 = smov 0  }
   0x5 LB: > { %s1645_s17 = sadd.s32 4294967295, %s1556_s16   ;;  %s1319_s18 = sadd.s32 4294967294, %s1556_s16   ;;  %s1556_s16 = sphi %s1630_s16, %s2225_s16   ;;  %s1552_s15 = sphi %s1628_s15, %s2224_s15   ;;  %s1548_s14 = sphi %s1626_s14, %s2223_s14   ;;  %s1544_s13 = sphi %s1624_s13, %s2222_s13  }
   0x6   : > { %s1649_s19 = sadd.s32 1, %s1556_s16   ;;  %s245_s20 = sadd.s32 1, %s1552_s15 }
   0x7   : > { %s242_s21 = ssub.s32 %s1556_s16, %s1649_s19  ;;  %p255_p0 = scmp.ne.s32.totalorder %s1552_s15, %s1548_s14 }
   0x8   : > { %p243_p1 = scmp.eq.s32.totalorder %s242_s21, 0  ;;  %p256_p2 = scmp.eq.s32.totalorder %s1645_s17, 1 }
   0x9   : > { %p261_p3 = scmp.ne.s32.totalorder %s1548_s14, %s1544_s13  ;;  %p262_p4 = scmp.eq.s32.totalorder %s1319_s18, 1 }
   0xa   : > { %s1660_s22 = scalar_select %p243_p1, %s1552_s15, %s245_s20  }
   0xb   : > { %p1662_p5 = por %p256_p2, %p255_p0  ;;  %p1666_p6 = por %p262_p4, %p261_p3 }
   0xc   : > { %p1322_p7 = scmp.ge.s32.totalorder %s1556_s16, 1  ;;  %p315_p8 = scmp.lt.s32.totalorder %s1556_s16, 3 }
   0xe   : > { %p316_p9 = pnand %p1322_p7, %p315_p8 }
   0xf   : > { %p353_p10 = scmp.lt.s32.totalorder (!%p316_p9), %s1645_s17, 1  ;;  %v1558_v0 = vmov (!%p316_p9), 0   ;;  %v364_v1 = vld [vmem:[%s2104_s3 + $0x8] sm:$0xff] (!%p316_p9)  ;;  %v477_v2 = vld [vmem:[%s2106_s5] sm:$0xff] (!%p316_p9)  ;;  %s2134_s0 = sld [smem:[#allocation5_spill]] (!%p316_p9)  ;;  %vm2121_vm0 = vcmask (!%p316_p9), 130048   ;;  %v554_v35 = vlaneseq (!%p316_p9) }
  0x10   : > { %319 = sbr.rel (%p316_p9) target bundleno = 1690 (0x69a), region = 60  ;;  %426 = vmatprep.mubr.bf16.mxu0 (!%p316_p9), %v1558_v0  ;;  %1407 = vset.pattern.permute.xlu0 (!%p316_p9), %v1558_v0  ;;  %v1492_v5 = vld [vmem:[%s2103_s2] sm:$0xff] (!%p316_p9)   ;;  %vm2119_vm3 = vcmask (!%p316_p9), 1043456   ;;  %vm2118_vm4 = vcmask (!%p316_p9), 64512   ;;  %s2116_s28 = smov (!%p316_p9), 16   ;;  %vm2120_vm14 = vcmask (!%p316_p9), 7168  }
  0x11   : > { %372 = vperm.xlu0 (!%p316_p9), %1407, %v364_v1   ;;  %526 = vmatprep.mubr.bf16.mxu1 (!%p316_p9), %v1558_v0  ;;  %v474_v20 = vld [vmem:[%s2105_s4] sm:$0xf] (!%p316_p9)  ;;  %s2112_s29 = smov (!%p316_p9), 127   ;;  %s2113_s11 = smov (!%p316_p9), 113   ;;  %v1332_v36 = vld [vmem:[%s2102_s1 + $0x6] sm:$0x3] (!%p316_p9) }
  0x12   : > { %1448 = vset.pattern.permute.xlu1 (!%p316_p9), %v1558_v0  ;;  %s2115_s12 = smov (!%p316_p9), 15   ;;  %v793_v34 = vld [vmem:[%s2108_s7] sm:$0xff] (!%p316_p9)  ;;  %s1565_s21 = smov (!%p316_p9), 112   ;;  %v555_v37 = vshrl.u32 (!%p316_p9), %v554_v35, 7  ;;  %v1333_v39 = vld [vmem:[%s2102_s1 + $0xa] sm:$0x3] (!%p316_p9) }
  0x13   : > { %s1566_s25 = smov (!%p316_p9), 111   ;;  %v1330_v38 = vld [vmem:[%s2102_s1 + $0x2] sm:$0x3] (!%p316_p9)  ;;  %v451_v40 = vld [vmem:[%s2102_s1] sm:$0x3] (!%p316_p9)  ;;  %vm461_vm7 = vcmp.ne.f32.partialorder (!%p316_p9), %v1332_v36, 0.0 }
  0x14   : > { %vm455_vm8 = vcmp.ne.f32.partialorder (!%p316_p9), %v1330_v38, 0.0  ;;  %v1742_v41 = vsub.s32 (!%p316_p9), 0, %v555_v37  ;;  %vm464_vm9 = vcmp.ne.f32.partialorder (!%p316_p9), %v1333_v39, 0.0  ;;  %vm452_vm10 = vcmp.ne.f32.partialorder (!%p316_p9), %v451_v40, 0.0  ;;  %v1331_v42 = vld [vmem:[%s2102_s1 + $0x4] sm:$0x3] (!%p316_p9) }
  0x15   : > { %480 = vperm.xlu0 (!%p316_p9), %1407, %v477_v2   ;;  %v627_v43 = vsel (!%p316_p9), %vm461_vm7, 1, %v1558_v0  ;;  %v1748_v44 = vsub.s32 (!%p316_p9), 1, %v555_v37  ;;  %v577_v45 = vsel (!%p316_p9), %vm455_vm8, 1, %v1558_v0  ;;  %v1334_v46 = vld [vmem:[%s2102_s1 + $0xc] sm:$0x3] (!%p316_p9)  ;;  %v654_v48 = vsel (!%p316_p9), %vm464_vm9, 1, %v1558_v0 }
  0x16   : > { %v1335_v47 = vld [vmem:[%s2102_s1 + $0xe] sm:$0x3] (!%p316_p9)  ;;  %v553_v49 = vsel (!%p316_p9), %vm452_vm10, 1, %v1558_v0  ;;  %vm458_vm11 = vcmp.ne.f32.partialorder (!%p316_p9), %v1331_v42, 0.0  ;;  %v631_v50 = vrot.slane (!%p316_p9), %v627_v43, %v1742_v41  ;;  %v581_v51 = vrot.slane (!%p316_p9), %v577_v45, %v1742_v41  ;;  %s2184_s20 = smov (!%p316_p9), 15   ;;  %s2186_s26 = smov (!%p316_p9), 127  }
  0x17   : > { %s354_s27 = scalar_select %p353_p10, %s1645_s17, 1  ;;  %vm467_vm12 = vcmp.ne.f32.partialorder %v1334_v46, 0.0  ;;  %vm470_vm13 = vcmp.ne.f32.partialorder %v1335_v47, 0.0  ;;  %v585_v52 = vrot.slane %v577_v45, %v1748_v44  ;;  %v658_v53 = vrot.slane %v654_v48, %v1742_v41 }
  0x18   : > { %v557_v54 = vrot.slane %v553_v49, %v1742_v41  ;;  %v602_v55 = vsel %vm458_vm11, 1, %v1558_v0  ;;  %v561_v56 = vrot.slane %v553_v49, %v1748_v44  ;;  %v635_v57 = vrot.slane %v627_v43, %v1748_v44 }
  0x19   : > { %s1356_s30 = sshll.u32 %s354_s27, 4  ;;  %s2114_s27 = smov 1   ;;  %vm1767_vm15 = vcmp.eq.s32.totalorder %v631_v50, 1  ;;  %v2135_v58 = vmov 0  ;;  %v1772_v59 = vsel %vm467_vm12, 1, %v1558_v0  ;;  %v704_v60 = vsel %vm470_vm13, 1, %v1558_v0 }
  0x1a   : > { %s357_s18 = scalar_lea.vmem %s2134_s0, %s1356_s30  ;;  %s1562_s30 = smov 17   ;;  %v2136_v58 = vsel %vm1767_vm15, 4294967295, %v2135_v58  ;;  %v606_v62 = vrot.slane %v602_v55, %v1742_v41  ;;  %v2141_v1 = vmov 0  ;;  %vm2123_vm7 = vcmask 138240  }
  0x1b   : > { %v1489_v3 = vld [vmem:[%s357_s18 + $0x4] ss:$8 sps:$4 sm:$0xff]   ;;  %v1491_v4 = vld [vmem:[%s357_s18] ss:$8 sps:$4 sm:$0xff]   ;;  %vm1788_vm8 = vcmp.eq.s32.totalorder %v557_v54, 1  ;;  %vm1799_vm9 = vcmp.eq.s32.totalorder %v561_v56, 1 }
  0x1c   : > { %394 = vmatprep.subr.bf16.mxu0 %v1489_v3  ;;  %v1336_v3 = vld [vmem:[%s2102_s1 + $0x10] sm:$0x3]  ;;  %vm1803_vm10 = vcmp.eq.s32.totalorder %v635_v57, 1  ;;  %vm1807_vm13 = vcmp.eq.s32.totalorder %v606_v62, 1  ;;  %s2183_s18 = smov 16  }
  0x1d   : > { %395 = vmatpush1.bf16.msra.mxu0 %v1491_v4  ;;  %v610_v4 = vrot.slane %v602_v55, %v1748_v44 }
  0x20   : > { %1329 = vmatmul.mubr.msk.bf16.vlgmr.msra.gmra.mrb[0].mxu0 %vm2121_vm0, %v1492_v5 }
  0x21   : > { %841 = vmatprep.mubr.bf16.mxu0 %v1558_v0 }
  0x90   : > { %v373_v8 = vpop.permute.xlu0 %372 }
  0x94   : > { %v481_v21 = vpop.permute.xlu0 %480 }
  0xf3   : > { %v1692_v6 = vpop.f32.mrb[0].mxu0 }
  0xf4   : > { %v1694_v7 = vpop.f32.mrb[1].mxu0 }
  0xf5   : > { %v432_v9 = vpop.f32.mrb[2].mxu0 }
  0xf6   : > { %v433_v10 = vadd.f32 %v432_v9, %v373_v8  ;;  %v434_v11 = vpop.f32.mrb[3].mxu0  ;;  %v683_v9 = vrot.slane %v1772_v59, %v1742_v41 }
  0xf7   : > { %v435_v12 = vadd.f32 %v434_v11, %v373_v8 }
  0xf8   : > { %vm439_vm1 = vcmp.gt.f32.partialorder %v433_v10, 0.0  ;;  %v443_v13 = vmul.f32 0.1, %v433_v10 }
  0xf9   : > { %v444_v14 = vmul.f32 0.1, %v435_v12  ;;  %vm440_vm2 = vcmp.gt.f32.partialorder %v435_v12, 0.0 }
  0xfa   : > { %v1696_v15 = vsel %vm439_vm1, %v433_v10, %v443_v13  ;;  %vm1775_vm1 = vcmp.eq.s32.totalorder %v581_v51, 1  ;;  %v708_v10 = vrot.slane %v704_v60, %v1742_v41 }
  0xfb   : > { %v1698_v16 = vsel %vm440_vm2, %v435_v12, %v444_v14  ;;  %v475_v17 = vpack.c.bf16 %v1696_v15, %v1696_v15  ;;  %vm2122_vm2 = vcmask 1039360   ;;  %v2147_v12 = vmov 0 }
  0xfc   : > { %v476_v18 = vpack.c.bf16 %v1698_v16, %v1698_v16  ;;  %v2148_v12 = vsel %vm1803_vm10, 4294967295, %v2147_v12 }
  0xfd   : > { %v489_v19 = vsel %vm2119_vm3, %v475_v17, 0 }
  0xfe   : > { %1337 = vmatprep.subr.msk.bf16.mxu1 %vm2119_vm3, %v476_v18  ;;  %vm1819_vm3 = vcmp.eq.s32.totalorder %v610_v4, 1 }
  0xff   : > { %495 = vmatpush1.bf16.msra.mxu1 %v489_v19 }
 0x102   : > { %1338 = vmatmul.mubr.msk.bf16.vlgmr.msra.gmra.mrb[0].mxu1 %vm2118_vm4, %v474_v20  ;;  %vm473_vm4 = vcmp.ne.f32.partialorder %v1336_v3, 0.0  ;;  %v662_v20 = vrot.slane %v654_v48, %v1748_v44 }
 0x103   : > { %910 = vmatprep.mubr.bf16.mxu1 %v1558_v0  ;;  %v1837_v43 = vsel %vm473_vm4, 1, %v1558_v0  ;;  %vm1861_vm4 = vcmp.eq.s32.totalorder %v683_v9, 1 }
 0x1d5   : > { %v528_v22 = vpop.f32.mrb[0].mxu1 }
 0x1d6   : > { %v529_v23 = vadd.f32 %v528_v22, %v481_v21  ;;  %v530_v24 = vpop.f32.mrb[1].mxu1  ;;  %v712_v22 = vrot.slane %v704_v60, %v1748_v44 }
 0x1d7   : > { %v531_v25 = vadd.f32 %v530_v24, %v481_v21  ;;  %v532_v26 = vpop.f32.mrb[2].mxu1  ;;  %v687_v21 = vrot.slane %v1772_v59, %v1748_v44 }
 0x1d8   : > { %vm535_vm5 = vcmp.gt.f32.partialorder %v529_v23, 0.0  ;;  %v537_v27 = vmul.f32 0.1, %v529_v23  ;;  %v533_v28 = vpop.f32.mrb[3].mxu1  ;;  %vm1848_vm11 = vcmp.eq.s32.totalorder %v712_v22, 1 }
 0x1d9   : > { %vm536_vm6 = vcmp.gt.f32.partialorder %v531_v25, 0.0  ;;  %v538_v29 = vmul.f32 0.1, %v531_v25  ;;  %vm1844_vm12 = vcmp.eq.s32.totalorder %v687_v21, 1 }
 0x1da   : > { %v1711_v30 = vsel %vm535_vm5, %v529_v23, %v537_v27  ;;  %vm1780_vm5 = vcmp.eq.s32.totalorder %v585_v52, 1 }
 0x1db   : > { %v1713_v31 = vsel %vm536_vm6, %v531_v25, %v538_v29  ;;  %vm1784_vm6 = vcmp.eq.s32.totalorder %v658_v53, 1 }
 0x1dc   : > { %v1418_v32 = vpack.i.bf16 %v1711_v30, %v1713_v31  ;;  %v1428_v33 = vpack.i.bf16 %v1713_v31, %v1711_v30  ;;  %v2142_v1 = vsel %vm1784_vm6, 4294967295, %v2141_v1 }
 0x1de   : > { %1419 = vrot.lane.b32.xlu0 %v1418_v32, %s2114_s27  ;;  %1409 = vrot.lane.b32.xlu1 %v1418_v32, %s2116_s28  ;;  %s2187_s27 = smov 113   ;;  %s1567_s28 = smov [#allocation2]  }
 0x1e2   : > { %1429 = vrot.lane.b32.xlu0 %v1428_v33, %s2112_s29  ;;  %1414 = vrot.lane.b32.xlu1 %v1418_v32, %s1562_s30  ;;  %s2185_s29 = smov 1  }
 0x1e6   : > { %1439 = vrot.lane.b32.xlu0 %v1428_v33, %s2113_s11  ;;  %1424 = vrot.lane.b32.xlu1 %v1418_v32, %s2115_s12  ;;  %s350_s12 = sand.u32 1, %s1548_s14  }
 0x1ea   : > { %796 = vperm.xlu0 %1407, %v793_v34   ;;  %1434 = vrot.lane.b32.xlu1 %v1428_v33, %s1565_s21 }
 0x1ee   : > { %1444 = vrot.lane.b32.xlu1 %v1428_v33, %s1566_s25 }
 0x250   : > { %v1420_v5 = vpop.permute.xlu0 %1419  ;;  %v1410_v8 = vpop.permute.xlu1 %1409 }
 0x251   : > { %v1422_v13 = vunpack.i.h.bf16 %v1420_v5  ;;  %v1421_v14 = vunpack.i.l.bf16 %v1420_v5  ;;  %v1412_v17 = vunpack.i.h.bf16 %v1410_v8  ;;  %v1411_v18 = vunpack.i.l.bf16 %v1410_v8 }
 0x253   : > { %v623_v23 = vsel %vm2120_vm14, %v1422_v13, %v1421_v14  ;;  %v626_v24 = vsel %vm2120_vm14, %v1421_v14, %v1422_v13  ;;  %v573_v25 = vsel %vm2121_vm0, %v1412_v17, %v1411_v18  ;;  %v576_v26 = vsel %vm2121_vm0, %v1411_v18, %v1412_v17 }
 0x254   : > { %v638_v28 = vsel %vm1767_vm15, %v626_v24, 0.0  ;;  %v588_v29 = vsel %vm1775_vm1, %v576_v26, 0.0  ;;  %v1430_v32 = vpop.permute.xlu0 %1429  ;;  %v1415_v33 = vpop.permute.xlu1 %1414  ;;  %v589_v34 = vsel %vm1780_vm5, %v573_v25, 0.0  ;;  %v639_v35 = vsel %vm1803_vm10, %v623_v23, 0.0 }
 0x255   : > { %v590_v36 = vpack.c.bf16 %v588_v29, %v588_v29  ;;  %v1432_v37 = vunpack.i.h.bf16 %v1430_v32  ;;  %v1431_v38 = vunpack.i.l.bf16 %v1430_v32  ;;  %vm1831_vm14 = vcmp.eq.s32.totalorder %v708_v10, 1 }
 0x256   : > { %v1417_v40 = vunpack.i.h.bf16 %v1415_v33  ;;  %v1416_v42 = vunpack.i.l.bf16 %v1415_v33  ;;  %vm1839_vm0 = vcmp.eq.s32.totalorder %v662_v20, 1  ;;  %v640_v46 = vpack.c.bf16 %v638_v28, %v638_v28 }
 0x257   : > { %v649_v47 = vsel %vm2122_vm2, %v1431_v38, %v1432_v37  ;;  %v591_v48 = vpack.c.bf16 %v589_v34, %v589_v34  ;;  %v641_v49 = vpack.c.bf16 %v639_v35, %v639_v35  ;;  %v653_v52 = vsel %vm2122_vm2, %v1432_v37, %v1431_v38 }
 0x258   : > { %v665_v53 = vsel %vm1784_vm6, %v649_v47, 0.0  ;;  %v549_v54 = vsel %vm2123_vm7, %v1417_v40, %v1416_v42  ;;  %v552_v55 = vsel %vm2123_vm7, %v1416_v42, %v1417_v40  ;;  %v1440_v56 = vpop.permute.xlu0 %1439  ;;  %v1425_v57 = vpop.permute.xlu1 %1424  ;;  %v746_v3 = vrot.slane %v590_v36, 4 }
 0x259   : > { %v564_v59 = vsel %vm1788_vm8, %v552_v55, 0.0  ;;  %v1442_v60 = vunpack.i.h.bf16 %v1440_v56  ;;  %v1441_v62 = vunpack.i.l.bf16 %v1440_v56  ;;  %v1427_v5 = vunpack.i.h.bf16 %v1425_v57 }
 0x25a   : > { %v566_v4 = vpack.c.bf16 %v564_v59, %v564_v59  ;;  %v1426_v8 = vunpack.i.l.bf16 %v1425_v57  ;;  %v565_v10 = vsel %vm1799_vm9, %v549_v54, 0.0  ;;  %v667_v13 = vpack.c.bf16 %v665_v53, %v665_v53 }
 0x25b   : > { %v2161_v14 = vmov 0  ;;  %v567_v17 = vpack.c.bf16 %v565_v10, %v565_v10  ;;  %v747_v18 = vrot.slane %v591_v48, 4  ;;  %v750_v20 = vrot.slane %v640_v46, 4 }
 0x25c   : > { %v2162_v14 = vsel %vm1861_vm4, 4294967295, %v2161_v14  ;;  %vm2163_vm2 = vcmask 924672   ;;  %vm2164_vm7 = vcmask 121856   ;;  %v1435_v24 = vpop.permute.xlu1 %1434  ;;  %v751_v25 = vrot.slane %v641_v49, 4 }
 0x25d   : > { %v678_v21 = vsel %vm2163_vm2, %v1442_v60, %v1441_v62  ;;  %v598_v22 = vsel %vm2164_vm7, %v1427_v5, %v1426_v8  ;;  %vm2165_vm10 = vmmov %vm2164_vm7  ;;  %v1437_v28 = vunpack.i.h.bf16 %v1435_v24  ;;  %v1436_v29 = vunpack.i.l.bf16 %v1435_v24 }
 0x25e   : > { %v601_v23 = vsel %vm2165_vm10, %v1426_v8, %v1427_v5  ;;  %vm2166_vm6 = vcmask 1043456   ;;  %v614_v34 = vsel %vm1819_vm3, %v598_v22, 0.0  ;;  %v666_v35 = vsel %vm1839_vm0, %v653_v52, 0.0 }
 0x25f   : > { %v613_v26 = vsel %vm1807_vm13, %v601_v23, 0.0  ;;  %v762_v9 = vsel %vm2166_vm6, %v566_v4, %v746_v3  ;;  %vm2167_vm15 = vmmov %vm2166_vm6  ;;  %vm2168_vm2 = vcmask 916480   ;;  %v616_v38 = vpack.c.bf16 %v614_v34, %v614_v34 }
 0x260   : > { %v615_v32 = vpack.c.bf16 %v613_v26, %v613_v26  ;;  %v766_v33 = vsel %vm2167_vm15, %v567_v17, %v747_v18  ;;  %v699_v36 = vsel %vm2168_vm2, %v1436_v29, %v1437_v28  ;;  %vm2169_vm7 = vmmov %vm2168_vm2  ;;  %v668_v40 = vpack.c.bf16 %v666_v35, %v666_v35  ;;  %v1445_v47 = vpop.permute.xlu1 %1444 }
 0x261   : > { %v703_v37 = vsel %vm2169_vm7, %v1437_v28, %v1436_v29  ;;  %809 = vmatprep.subr.bf16.mxu0 %v766_v33  ;;  %v715_v42 = vsel %vm1831_vm14, %v699_v36, 0.0  ;;  %v737_v46 = vrot.slane %v1837_v43, %v1748_v44  ;;  %v643_v48 = vpack.c.bf16 %v1713_v31, %v1713_v31  ;;  %vm2170_vm15 = vmmov %vm2166_vm6  ;;  %v792_v29 = vld [vmem:[%s2107_s6] sm:$0xf] }
 0x262   : > { %810 = vmatpush1.bf16.msra.mxu0 %v762_v9  ;;  %v733_v49 = vrot.slane %v1837_v43, %v1742_v41  ;;  %v1447_v52 = vunpack.i.h.bf16 %v1445_v47  ;;  %v1446_v53 = vunpack.i.l.bf16 %v1445_v47  ;;  %v774_v54 = vsel %vm2170_vm15, %v616_v38, %v751_v25  ;;  %vm2174_vm15 = vmmov %vm2166_vm6  ;;  %v1342_v9 = vld [vmem:[%s2106_s5 + $0x8] sm:$0xff]  ;;  %v1345_v43 = vld [vmem:[%s2107_s6 + $0x4] sm:$0xf] }
 0x263   : > { %v770_v55 = vsel %vm2166_vm6, %v615_v32, %v750_v20  ;;  %vm2127_vm10 = vcmask 908288   ;;  %811 = vmatprep.subr.bf16.mxu0 %v774_v54  ;;  %v755_v56 = vrot.slane %v668_v40, 4  ;;  %v691_v57 = vsel %vm1844_vm12, %v678_v21, 0.0  ;;  %866 = vperm.xlu1 %1448, %v1342_v9  }
 0x264   : > { %v716_v44 = vsel %vm1848_vm11, %v703_v37, 0.0  ;;  %vm2171_vm2 = vcmask 924672   ;;  %v717_v59 = vpack.c.bf16 %v715_v42, %v715_v42  ;;  %v754_v3 = vrot.slane %v667_v13, 4 }
 0x265   : > { %v674_v31 = vsel %vm2171_vm2, %v1441_v62, %v1442_v60  ;;  %v718_v41 = vpack.c.bf16 %v716_v44, %v716_v44  ;;  %vm1893_vm7 = vcmp.eq.s32.totalorder %v737_v46, 1  ;;  %v782_v4 = vsel %vm2174_vm15, %v643_v48, %v755_v56  ;;  %vm2177_vm2 = vmmov %vm2174_vm15 }
 0x266   : > { %812 = vmatpush1.bf16.msra.mxu0 %v770_v55  ;;  %v642_v5 = vpack.c.bf16 %v1711_v30, %v1711_v30  ;;  %vm1900_vm6 = vcmp.eq.s32.totalorder %v733_v49, 1  ;;  %v2175_v8 = vmov 0  ;;  %v724_v10 = vsel %vm2127_vm10, %v1446_v53, %v1447_v52  ;;  %vm2178_vm15 = vmmov %vm2177_vm2 }
 0x267   : > { %v2176_v8 = vsel %vm1900_vm6, 4294967295, %v2175_v8  ;;  %v728_v60 = vsel %vm2127_vm10, %v1447_v52, %v1446_v53  ;;  %813 = vmatprep.subr.bf16.mxu0 %v782_v4  ;;  %v693_v62 = vpack.c.bf16 %v691_v57, %v691_v57  ;;  %v759_v13 = vrot.slane %v718_v41, 4  ;;  %vm2179_vm10 = vmmov %vm2177_vm2 }
 0x268   : > { %v690_v17 = vsel %vm1861_vm4, %v674_v31, 0.0  ;;  %v778_v18 = vsel %vm2177_vm2, %v642_v5, %v754_v3  ;;  %v758_v21 = vrot.slane %v717_v59, 4  ;;  %v741_v30 = vsel %vm1893_vm7, %v728_v60, 0.0  ;;  %vm2180_vm4 = vmmov %vm2177_vm2  ;;  %v363_v60 = vld [vmem:[%s2104_s3] sm:$0xff] }
 0x269   : > { %v790_v20 = vsel %vm2178_vm15, %v693_v62, %v759_v13  ;;  %v740_v22 = vsel %vm1900_vm6, %v724_v10, 0.0  ;;  %v692_v23 = vpack.c.bf16 %v690_v17, %v690_v17  ;;  %v743_v25 = vpack.c.bf16 %v741_v30, %v741_v30  ;;  %v797_v32 = vpop.permute.xlu0 %796  ;;  %v1346_v62 = vld [vmem:[%s2108_s7 + $0x8] sm:$0xff]  ;;  %v1164_v17 = vld [vmem:[%s2110_s9] sm:$0xff] }
 0x26a   : > { %814 = vmatpush1.bf16.msra.mxu0 %v778_v18  ;;  %v742_v26 = vpack.c.bf16 %v740_v22, %v740_v22  ;;  %vm2129_vm15 = vcmask 588800   ;;  %vm2182_vm6 = vcmask 64512   ;;  %v1165_v13 = vld [vmem:[%s2110_s9 + $0x8] sm:$0xff] }
 0x26b   : > { %815 = vmatprep.subr.bf16.mxu0 %v790_v20  ;;  %v786_v24 = vsel %vm2179_vm10, %v692_v23, %v758_v21 }
 0x26c   : > { %v804_v28 = vsel %vm2177_vm2, %v742_v26, 0 }
 0x26e   : > { %816 = vmatpush1.bf16.msra.mxu0 %v786_v24 }
 0x26f   : > { %1339 = vmatprep.subr.msk.bf16.mxu0 %vm2180_vm4, %v743_v25 }
 0x272   : > { %818 = vmatpush1.bf16.msra.mxu0 %v804_v28 }
 0x275   : > { %1340 = vmatmul.mubr.msk.bf16.vlgmr.msra.gmra.mrb[4].mxu0 %vm2129_vm15, %v792_v29  ;;  %vm2181_vm15 = vmmov %vm2177_vm2 }
 0x276   : > { %1216 = vmatprep.mubr.bf16.mxu0 %v1558_v0 }
 0x348   : > { %v843_v33 = vpop.f32.mrb[4].mxu0 }
 0x349   : > { %v844_v34 = vadd.f32 %v843_v33, %v797_v32  ;;  %v845_v35 = vpop.f32.mrb[5].mxu0 }
 0x34a   : > { %v846_v36 = vadd.f32 %v845_v35, %v797_v32  ;;  %v847_v37 = vpop.f32.mrb[6].mxu0 }
 0x34b   : > { %v850_v38 = vadd.f32 %v844_v34, %v1696_v15  ;;  %v848_v40 = vpop.f32.mrb[7].mxu0  ;;  %v1341_v15 = vld [vmem:[%s2105_s4 + $0x4] sm:$0xf] }
 0x34c   : > { %v851_v42 = vadd.f32 %v846_v36, %v1698_v16  ;;  %v867_v16 = vpop.permute.xlu1 %866 }
 0x34d   : > { %vm852_vm4 = vcmp.gt.f32.partialorder %v850_v38, 0.0  ;;  %v854_v46 = vmul.f32 0.1, %v850_v38 }
 0x34e   : > { %vm853_vm10 = vcmp.gt.f32.partialorder %v851_v42, 0.0  ;;  %v855_v47 = vmul.f32 0.1, %v851_v42 }
 0x34f   : > { %v1927_v48 = vsel %vm852_vm4, %v850_v38, %v854_v46 }
 0x350   : > { %v1929_v49 = vsel %vm853_vm10, %v851_v42, %v855_v47  ;;  %v860_v52 = vpack.c.bf16 %v1927_v48, %v1927_v48 }
 0x351   : > { %v861_v53 = vpack.c.bf16 %v1929_v49, %v1929_v49 }
 0x352   : > { %v873_v54 = vsel %vm2177_vm2, %v860_v52, 0  ;;  %vm2190_vm2 = vcmask 130048  }
 0x353   : > { %1343 = vmatprep.subr.msk.bf16.mxu1 %vm2181_vm15, %v861_v53 }
 0x354   : > { %879 = vmatpush1.bf16.msra.mxu1 %v873_v54 }
 0x357   : > { %1344 = vmatmul.mubr.msk.bf16.vlgmr.msra.gmra.mrb[4].mxu1 %vm2182_vm6, %v1341_v15  ;;  %vm2188_vm6 = vcmask 138240  }
 0x358   : > { %1131 = vmatprep.mubr.bf16.mxu1 %v1558_v0  ;;  %vm2189_vm15 = vmmov %vm2188_vm6 }
 0x42a   : > { %v912_v55 = vpop.f32.mrb[4].mxu1 }
 0x42b   : > { %v913_v56 = vadd.f32 %v912_v55, %v867_v16  ;;  %v914_v57 = vpop.f32.mrb[5].mxu1 }
 0x42c   : > { %v915_v44 = vadd.f32 %v914_v57, %v867_v16  ;;  %v916_v31 = vpop.f32.mrb[6].mxu1 }
 0x42d   : > { %vm919_vm4 = vcmp.gt.f32.partialorder %v913_v56, 0.0  ;;  %v921_v59 = vmul.f32 0.1, %v913_v56  ;;  %v917_v3 = vpop.f32.mrb[7].mxu1 }
 0x42e   : > { %vm920_vm10 = vcmp.gt.f32.partialorder %v915_v44, 0.0  ;;  %v922_v41 = vmul.f32 0.1, %v915_v44 }
 0x42f   : > { %v1942_v4 = vsel %vm919_vm4, %v913_v56, %v921_v59  ;;  %vm2191_vm4 = vmmov %vm2190_vm2 }
 0x430   : > { %v1944_v5 = vsel %vm920_vm10, %v915_v44, %v922_v41  ;;  %vm2192_vm10 = vcmask 121856  }
 0x431   : > { %v1454_v10 = vpack.i.bf16 %v1942_v4, %v1944_v5  ;;  %v1474_v0 = vpack.i.bf16 %v1944_v5, %v1942_v4  ;;  %v980_v19 = vpack.c.bf16 %v1944_v5, %v1944_v5 }
 0x433   : > { %1455 = vrot.lane.b32.xlu1 %v1454_v10, %s1562_s30  ;;  %1450 = vrot.lane.b32.xlu0 %v1454_v10, %s2183_s18  ;;  %s1323_s30 = sshll.u32 %s350_s12, 5 }
 0x437   : > { %1465 = vrot.lane.b32.xlu1 %v1454_v10, %s2184_s20  ;;  %1460 = vrot.lane.b32.xlu0 %v1454_v10, %s2185_s29  ;;  %s352_s20 = scalar_lea.vmem [#allocation2], %s1323_s30  ;;  %s1498_s30 = sshll.u32 %s1567_s28, 4  ;;  %s1499_s30 = int_to_ptr.vmem [resolvable:$false] %s1498_s30 }
 0x438   : > { %s1257_s29 = sshll.u32 %s352_s20, 4  ;;  %s1500_s0 = scalar_lea.vmem %s1499_s30, 1024  ;;  %s2050_s29 = int_to_ptr.vmem [resolvable:$true] %s1257_s29 }
 0x439   : > { %s1494_s11 = scalar_lea.vmem %s2050_s29, 512  ;;  %p1501_p0 = scmp.lt.s32.totalorder %s2050_s29, %s1499_s30 }
 0x43a   : > { %p1495_p11 = scmp.ne.s32.totalorder %s2050_s29, %s1494_s11  ;;  %p1502_p1 = scmp.lt.s32.totalorder %s1500_s0, %s1494_s11 }
 0x43b   : > { %1475 = vrot.lane.b32.xlu1 %v1474_v0, %s1565_s21  ;;  %1470 = vrot.lane.b32.xlu0 %v1474_v0, %s2186_s26  ;;  %s1357_s21 = sshll.u32 %s1645_s17, 9  ;;  %s2059_s17 = scalar_lea.sflag [#allocation3], %s350_s12 }
 0x43c   : > { %p1496_p12 = pnand %p1495_p11, %p1662_p5  ;;  %p1503_p2 = por %p1502_p1, %p1501_p0 }
 0x43e   : > { %p1497_p13 = pneg %p1496_p12 }
 0x43f   : > { %1485 = vrot.lane.b32.xlu1 %v1474_v0, %s1566_s25  ;;  %1480 = vrot.lane.b32.xlu0 %v1474_v0, %s2187_s27  ;;  %s2055_s27 = scalar_lea.hbm %s2111_s10, %s1357_s21 }
 0x440   : > { %p1504_p3 = pnand %p1503_p2, %p1497_p13 }
 0x443   : > { %367 = vperm.xlu1 %1448, %v363_v60   ;;  %1087 = vperm.xlu0 %1407, %v1346_v62  }
 0x447   : > { %1173 = vperm.xlu1 %1448, %v1165_v13   ;;  %1168 = vperm.xlu0 %1407, %v1164_v17  }
 0x4a5   : > { %v1456_v18 = vpop.permute.xlu1 %1455  ;;  %v1451_v20 = vpop.permute.xlu0 %1450 }
 0x4a6   : > { %v1458_v21 = vunpack.i.h.bf16 %v1456_v18  ;;  %v1457_v30 = vunpack.i.l.bf16 %v1456_v18  ;;  %v1453_v22 = vunpack.i.h.bf16 %v1451_v20  ;;  %v1452_v23 = vunpack.i.l.bf16 %v1451_v20 }
 0x4a8   : > { %v932_v24 = vsel %vm2188_vm6, %v1458_v21, %v1457_v30  ;;  %v935_v25 = vsel %vm2189_vm15, %v1457_v30, %v1458_v21  ;;  %v945_v26 = vsel %vm2190_vm2, %v1453_v22, %v1452_v23  ;;  %v948_v28 = vsel %vm2191_vm4, %v1452_v23, %v1453_v22 }
 0x4a9   : > { %v936_v29 = vsel %vm1788_vm8, %v935_v25, 0.0  ;;  %v949_v9 = vsel %vm1775_vm1, %v948_v28, 0.0  ;;  %v1466_v32 = vpop.permute.xlu1 %1465  ;;  %v1461_v33 = vpop.permute.xlu0 %1460  ;;  %v950_v34 = vsel %vm1780_vm5, %v945_v26, 0.0  ;;  %v937_v38 = vsel %vm1799_vm9, %v932_v24, 0.0  ;;  %vm2194_vm1 = vmmov %vm2192_vm10 }
 0x4aa   : > { %v951_v35 = vpack.c.bf16 %v949_v9, %v949_v9  ;;  %v1468_v36 = vunpack.i.h.bf16 %v1466_v32  ;;  %v1467_v37 = vunpack.i.l.bf16 %v1466_v32  ;;  %v1463_v40 = vunpack.i.h.bf16 %v1461_v33 }
 0x4ab   : > { %v1462_v42 = vunpack.i.l.bf16 %v1461_v33  ;;  %v952_v46 = vpack.c.bf16 %v950_v34, %v950_v34  ;;  %v938_v52 = vpack.c.bf16 %v936_v29, %v936_v29  ;;  %vm2193_vm8 = vcmask 7168  }
 0x4ac   : > { %v961_v2 = vsel %vm2192_vm10, %v1467_v37, %v1468_v36  ;;  %v1035_v47 = vrot.slane %v951_v35, 4  ;;  %v939_v15 = vpack.c.bf16 %v937_v38, %v937_v38  ;;  %v958_v16 = vsel %vm2194_vm1, %v1468_v36, %v1467_v37  ;;  %vm2197_vm6 = vmmov %vm2193_vm8 }
 0x4ad   : > { %v974_v61 = vsel %vm2193_vm8, %v1462_v42, %v1463_v40  ;;  %v1476_v53 = vpop.permute.xlu1 %1475  ;;  %v1471_v54 = vpop.permute.xlu0 %1470  ;;  %v1036_v63 = vrot.slane %v952_v46, 4  ;;  %vm2195_vm5 = vnez %v2136_v58  ;;  %v962_v57 = vsel %vm1807_vm13, %v961_v2, 0.0 }
 0x4ae   : > { %v975_v55 = vsel %vm2195_vm5, %v974_v61, 0.0  ;;  %v1478_v11 = vunpack.i.h.bf16 %v1476_v53  ;;  %v1477_v56 = vunpack.i.l.bf16 %v1476_v53  ;;  %v1473_v44 = vunpack.i.h.bf16 %v1471_v54 }
 0x4af   : > { %v1472_v31 = vunpack.i.l.bf16 %v1471_v54  ;;  %vm2196_vm9 = vcmask 1043456   ;;  %v971_v3 = vsel %vm2197_vm6, %v1463_v40, %v1462_v42  ;;  %v977_v41 = vpack.c.bf16 %v975_v55, %v975_v55 }
 0x4b0   : > { %v1055_v59 = vsel %vm2196_vm9, %v939_v15, %v1036_v63  ;;  %vm2198_vm15 = vmmov %vm2196_vm9  ;;  %vm2199_vm2 = vcmask 916480   ;;  %vm2200_vm4 = vcmask 1039360   ;;  %v964_v62 = vpack.c.bf16 %v962_v57, %v962_v57 }
 0x4b1   : > { %1099 = vmatprep.subr.bf16.mxu1 %v1055_v59  ;;  %v1051_v10 = vsel %vm2198_vm15, %v938_v52, %v1035_v47  ;;  %v1011_v0 = vsel %vm2199_vm2, %v1477_v56, %v1478_v11  ;;  %v985_v58 = vsel %vm2200_vm4, %v1472_v31, %v1473_v44  ;;  %v1481_v60 = vpop.permute.xlu0 %1480  ;;  %vm2201_vm13 = vmmov %vm2200_vm4  ;;  %vm2202_vm10 = vnez %v2142_v1  ;;  %v1486_v18 = vpop.permute.xlu1 %1485 }
 0x4b2   : > { %1100 = vmatpush1.bf16.msra.mxu1 %v1051_v10  ;;  %v989_v13 = vsel %vm2201_vm13, %v1473_v44, %v1472_v31  ;;  %v990_v17 = vsel %vm2202_vm10, %v985_v58, 0.0  ;;  %v963_v20 = vsel %vm1819_vm3, %v958_v16, 0.0  ;;  %v1483_v30 = vunpack.i.h.bf16 %v1481_v60  ;;  %vm2204_vm1 = vmmov %vm2199_vm2 }
 0x4b3   : > { %v992_v21 = vpack.c.bf16 %v990_v17, %v990_v17  ;;  %v1482_v22 = vunpack.i.l.bf16 %v1481_v60  ;;  %vm2203_vm8 = vnez %v2148_v12  ;;  %v1015_v24 = vsel %vm2204_vm1, %v1478_v11, %v1477_v56  ;;  %vm2209_vm6 = vmmov %vm2196_vm9 }
 0x4b4   : > { %v976_v23 = vsel %vm2203_vm8, %v971_v3, 0.0  ;;  %v1016_v5 = vsel %vm1831_vm14, %v1011_v0, 0.0  ;;  %v1039_v26 = vrot.slane %v977_v41, 4  ;;  %v1488_v28 = vunpack.i.h.bf16 %v1486_v18  ;;  %vm2207_vm14 = vmmov %vm2196_vm9 }
 0x4b5   : > { %v978_v25 = vpack.c.bf16 %v976_v23, %v976_v23  ;;  %vm2205_vm5 = vcmask 924672   ;;  %v965_v29 = vpack.c.bf16 %v963_v20, %v963_v20  ;;  %v991_v27 = vsel %vm1839_vm0, %v989_v13, 0.0  ;;  %vm2212_vm15 = vmmov %vm2209_vm6 }
 0x4b6   : > { %v1002_v1 = vsel %vm2205_vm5, %v1483_v30, %v1482_v22  ;;  %v1487_v9 = vunpack.i.l.bf16 %v1486_v18  ;;  %vm2206_vm3 = vmmov %vm2205_vm5  ;;  %v993_v12 = vpack.c.bf16 %v991_v27, %v991_v27  ;;  %v1059_v34 = vsel %vm2196_vm9, %v964_v62, %v1039_v26 }
 0x4b7   : > { %v998_v32 = vsel %vm2206_vm3, %v1482_v22, %v1483_v30  ;;  %v1040_v33 = vrot.slane %v978_v25, 4  ;;  %v1043_v35 = vrot.slane %v992_v21, 4  ;;  %v1004_v39 = vsel %vm1844_vm12, %v1002_v1, 0.0  ;;  %vm2213_vm2 = vmmov %vm2209_vm6  ;;  %v1493_v25 = vld [vmem:[%s2109_s8] sm:$0xff]  }
 0x4b8   : > { %v1017_v36 = vsel %vm1848_vm11, %v1015_v24, 0.0  ;;  %v1044_v38 = vrot.slane %v993_v12, 4  ;;  %v1006_v40 = vpack.c.bf16 %v1004_v39, %v1004_v39  ;;  %v979_v42 = vpack.c.bf16 %v1942_v4, %v1942_v4  ;;  %vm2215_vm13 = vmmov %vm2213_vm2 }
 0x4b9   : > { %v1063_v37 = vsel %vm2207_vm14, %v965_v29, %v1040_v33  ;;  %v1019_v45 = vpack.c.bf16 %v1017_v36, %v1017_v36  ;;  %vm2208_vm0 = vnez %v2162_v14  ;;  %v1018_v47 = vpack.c.bf16 %v1016_v5, %v1016_v5  ;;  %vm2216_vm10 = vmmov %vm2213_vm2 }
 0x4ba   : > { %1101 = vmatprep.subr.bf16.mxu1 %v1063_v37  ;;  %v1003_v46 = vsel %vm2208_vm0, %v998_v32, 0.0  ;;  %v1071_v2 = vsel %vm2209_vm6, %v980_v19, %v1044_v38  ;;  %vm2210_vm12 = vcmask 908288   ;;  %v1067_v61 = vsel %vm2212_vm15, %v979_v42, %v1043_v35  ;;  %vm2217_vm8 = vmmov %vm2213_vm2 }
 0x4bb   : > { %1102 = vmatpush1.bf16.msra.mxu1 %v1059_v34  ;;  %v1048_v50 = vrot.slane %v1019_v45, 4  ;;  %v1024_v51 = vsel %vm2210_vm12, %v1487_v9, %v1488_v28  ;;  %vm2211_vm11 = vmmov %vm2210_vm12  ;;  %v1005_v54 = vpack.c.bf16 %v1003_v46, %v1003_v46  ;;  %vm2214_vm4 = vnez %v2176_v8 }
 0x4bc   : > { %v1028_v52 = vsel %vm2211_vm11, %v1488_v28, %v1487_v9  ;;  %1103 = vmatprep.subr.bf16.mxu1 %v1071_v2  ;;  %v1029_v14 = vsel %vm2214_vm4, %v1024_v51, 0.0  ;;  %v1047_v15 = vrot.slane %v1018_v47, 4  ;;  %vm2219_vm14 = vmmov %vm2213_vm2  ;;  %vm2221_vm6 = vcmask 130048  }
 0x4bd   : > { %v1079_v53 = vsel %vm2213_vm2, %v1006_v40, %v1048_v50  ;;  %v1030_v4 = vsel %vm1893_vm7, %v1028_v52, 0.0  ;;  %v1031_v55 = vpack.c.bf16 %v1029_v14, %v1029_v14  ;;  %vm2218_vm7 = vcmask 588800   ;;  %vm2220_vm0 = vmmov %vm2213_vm2 }
 0x4be   : > { %v1075_v63 = vsel %vm2215_vm13, %v1005_v54, %v1047_v15  ;;  %v1032_v16 = vpack.c.bf16 %v1030_v4, %v1030_v4 }
 0x4bf   : > { %1104 = vmatpush1.bf16.msra.mxu1 %v1067_v61  ;;  %v1094_v11 = vsel %vm2217_vm8, %v1031_v55, 0 }
 0x4c0   : > { %1105 = vmatprep.subr.bf16.mxu1 %v1079_v53 }
 0x4c2   : > { %v368_v8 = vpop.permute.xlu1 %367  ;;  %v1088_v44 = vpop.permute.xlu0 %1087 }
 0x4c3   : > { %1106 = vmatpush1.bf16.msra.mxu1 %v1075_v63  ;;  %v429_v56 = vadd.f32 %v1692_v6, %v368_v8  ;;  %v431_v57 = vadd.f32 %v1694_v7, %v368_v8 }
 0x4c4   : > { %1347 = vmatprep.subr.msk.bf16.mxu1 %vm2216_vm10, %v1032_v16 }
 0x4c5   : > { %v441_v0 = vmul.f32 0.1, %v429_v56  ;;  %vm437_vm1 = vcmp.gt.f32.partialorder %v429_v56, 0.0  ;;  %v442_v19 = vmul.f32 0.1, %v431_v57  ;;  %vm438_vm5 = vcmp.gt.f32.partialorder %v431_v57, 0.0 }
 0x4c6   : > { %v1169_v26 = vpop.permute.xlu0 %1168  ;;  %v1174_v27 = vpop.permute.xlu1 %1173 }
 0x4c7   : > { %1108 = vmatpush1.bf16.msra.mxu1 %v1094_v11  ;;  %v445_v7 = vsel %vm437_vm1, %v429_v56, %v441_v0  ;;  %v446_v18 = vsel %vm438_vm5, %v431_v57, %v442_v19 }
 0x4c8   : > { %v449_v22 = vpack.c.bf16 %v445_v7, %v445_v7  ;;  %v450_v23 = vpack.c.bf16 %v446_v18, %v446_v18 }
 0x4ca   : > { %1348 = vmatmul.mubr.msk.bf16.vlgmr.msra.gmra.mrb[8].mxu1 %vm2218_vm7, %v1345_v43 }
 0x59d   : > { %v1133_v31 = vpop.f32.mrb[8].mxu1 }
 0x59e   : > { %v1134_v59 = vadd.f32 %v1133_v31, %v1088_v44  ;;  %v1135_v3 = vpop.f32.mrb[9].mxu1 }
 0x59f   : > { %v1136_v41 = vadd.f32 %v1135_v3, %v1088_v44  ;;  %v1137_v10 = vpop.f32.mrb[10].mxu1 }
 0x5a0   : > { %v1140_v58 = vadd.f32 %v1134_v59, %v1927_v48  ;;  %v1138_v60 = vpop.f32.mrb[11].mxu1 }
 0x5a1   : > { %v1141_v62 = vadd.f32 %v1136_v41, %v1929_v49 }
 0x5a2   : > { %vm1142_vm3 = vcmp.gt.f32.partialorder %v1140_v58, 0.0  ;;  %v1144_v13 = vmul.f32 0.1, %v1140_v58 }
 0x5a3   : > { %vm1143_vm9 = vcmp.gt.f32.partialorder %v1141_v62, 0.0  ;;  %v1145_v6 = vmul.f32 0.1, %v1141_v62 }
 0x5a4   : > { %v1146_v17 = vsel %vm1142_vm3, %v1140_v58, %v1144_v13 }
 0x5a5   : > { %v1148_v20 = vpack.c.bf16 %v1146_v17, %v1146_v17  ;;  %v1147_v21 = vsel %vm1143_vm9, %v1141_v62, %v1145_v6 }
 0x5a6   : > { %v1149_v30 = vpack.c.bf16 %v1147_v21, %v1147_v21 }
 0x5a7   : > { %v1152_v48 = vrot.slane %v1148_v20, 4 }
 0x5a8   : > { %v1153_v24 = vrot.slane %v1149_v30, 4 }
 0x5a9   : > { %v1156_v5 = vsel %vm2219_vm14, %v449_v22, %v1152_v48 }
 0x5aa   : > { %v1160_v49 = vsel %vm2220_vm0, %v450_v23, %v1153_v24 }
 0x5ab   : > { %1184 = vmatprep.subr.bf16.mxu0 %v1160_v49 }
 0x5ac   : > { %1185 = vmatpush1.bf16.msra.mxu0 %v1156_v5 }
 0x5af   : > { %1350 = vmatmul.mubr.msk.bf16.vlgmr.msra.gmra.mrb[8].mxu0 %vm2221_vm6, %v1493_v25 }
 0x682   : > { %v1218_v28 = vpop.f32.mrb[8].mxu0 }
 0x683   : > { %v1219_v1 = vadd.f32 %v1218_v28, %v1169_v26  ;;  %v1220_v29 = vpop.f32.mrb[9].mxu0 }
 0x684   : > { %v1221_v9 = vadd.f32 %v1220_v29, %v1169_v26  ;;  %v1222_v32 = vpop.f32.mrb[10].mxu0 }
 0x685   : > { %vm1227_vm12 = vcmp.gt.f32.partialorder %v1219_v1, 0.0  ;;  %v1231_v33 = vmul.f32 0.1, %v1219_v1  ;;  %v1223_v12 = vadd.f32 %v1222_v32, %v1174_v27  ;;  %v1224_v34 = vpop.f32.mrb[11].mxu0 }
 0x686   : > { %vm1228_vm11 = vcmp.gt.f32.partialorder %v1221_v9, 0.0  ;;  %v1232_v35 = vmul.f32 0.1, %v1221_v9  ;;  %v1225_v39 = vadd.f32 %v1224_v34, %v1174_v27 }
 0x687   : > { %v1235_v36 = vsel %vm1227_vm12, %v1219_v1, %v1231_v33  ;;  %vm1229_vm15 = vcmp.gt.f32.partialorder %v1223_v12, 0.0  ;;  %v1233_v37 = vmul.f32 0.1, %v1223_v12 }
 0x688   : > { %1239 = vst [vmem:[%s352_s20] sm:$0xff] %v1235_v36  ;;  %v1236_v38 = vsel %vm1228_vm11, %v1221_v9, %v1232_v35  ;;  %vm1230_vm2 = vcmp.gt.f32.partialorder %v1225_v39, 0.0  ;;  %v1234_v40 = vmul.f32 0.1, %v1225_v39 }
 0x689   : > { %1240 = vst [vmem:[%s352_s20 + $0x8] sm:$0xff] %v1236_v38  ;;  %v1237_v45 = vsel %vm1229_vm15, %v1223_v12, %v1233_v37 }
 0x68a   : > { %1241 = vst [vmem:[%s352_s20 + $0x10] sm:$0xff] %v1237_v45  ;;  %v1238_v42 = vsel %vm1230_vm2, %v1225_v39, %v1234_v40 }
 0x68b   : > { %1242 = vst [vmem:[%s352_s20 + $0x18] sm:$0xff] %v1238_v42 }
 0x68c   : > { %1507 = shalt.err (!%p1504_p3)
}
 0x68d   : > { %s1508_s12 = scalar_lea.hbm %s2055_s27, 512  ;;  %s1512_s26 = scalar_lea.hbm %s2111_s10, 1024 }
 0x68e   : > { %p1509_p4 = scmp.ne.s32.totalorder %s2055_s27, %s1508_s12  ;;  %p1513_p9 = scmp.lt.u32.totalorder %s2055_s27, %s2111_s10 }
 0x68f   : > { %p1514_p10 = scmp.lt.u32.totalorder %s1512_s26, %s1508_s12  ;;  %p1516_p12 = scmp.lt.u32.totalorder %s1508_s12, %s2055_s27 }
 0x690   : > { %p1510_p7 = pnand %p1509_p4, %p1662_p5 }
 0x691   : > { %p1515_p11 = por %p1514_p10, %p1513_p9 }
 0x692   : > { %p1511_p8 = pneg %p1510_p7 }
 0x693   : > { %p1517_p13 = por %p1516_p12, %p1515_p11 }
 0x695   : > { %p1518_p0 = pnand %p1517_p13, %p1511_p8 }
 0x697   : > { %1521 = shalt.err (!%p1518_p0)
}
 0x698   : > { %s1568_s0 = smov 256  }
 0x699   : > { %1358 = dma.vmem_to_hbm [thread:$0]  (%p1662_p5), %s2050_s29, 512, %s2055_s27, %s2059_s17, %s1568_s0, %s1568_s0, %s2183_s18  }
 0x69a PF: > { %p1364_p1 = scmp.ge.s32.totalorder %s1556_s16, 2  ;;  %s1272_s11 = sand.u32 1, %s1544_s13  }
 0x69b   : > { %s1273_s30 = scalar_lea.sflag [#allocation3], %s1272_s11 }
 0x69c   : > { %p1361_p2 = pnand %p1364_p1, %p1666_p6 }
 0x69e   : > { %1539 = dma.done.wait (!%p1361_p2), %s1273_s30, 512  }
 0x69f   : > { %1541 = vsyncadd (!%p1361_p2), %s1273_s30, 4294966784  ;;  %p20_p3 = scmp.ge.s32.totalorder %s1649_s19, 4   ;;  %s2222_s13 = smov %s1548_s14 }
 0x6a0   : > { %s2223_s14 = smov %s1552_s15  ;;  %s2224_s15 = smov %s1660_s22 }
 0x6a1   : > { %s2225_s16 = smov %s1649_s19  ;;  %22 = sbr.rel (!%p20_p3) target bundleno = 5 (0x5), region = 106 }
 0x6a8   :  { %1278 = vsyncpa [#allocation3], 1 }
 0x6a9   :  { %1280 = vsyncpa [#allocation3 + $0x1], 1 }

</bundles_post_ra>
